<compile_context>
chip_gen: v7x
topology: tpu7x:2x2x1
jax: 0.10.0
libtpu: 0.0.40
codegen_flags: <defaults>
</compile_context>

<pallas_src>
import functools

import jax
import jax.numpy as jnp
from jax import lax
from jax.experimental import pallas as pl
from jax.experimental.pallas import tpu as pltpu

# --- hyper-parameters from RnCLoss_rot_nonSym.__init__ defaults ---
TEMPERATURE = 2.0
# TODO(synk): CFG.smooth_l1_beta comes from an external config; using the
# PyTorch F.smooth_l1_loss default beta = 1.0 deterministically.
SMOOTH_L1_BETA = 1.0
EPS = 1e-7


def _smooth_l1(d):
    ad = jnp.abs(d)
    return jnp.where(ad < SMOOTH_L1_BETA,
                     0.5 * d * d / SMOOTH_L1_BETA,
                     ad - 0.5 * SMOOTH_L1_BETA)


def _rnc_kernel(feat_all_ref, feat_blk_ref, sq_row_ref,
                lab_all_ref, lab_t_blk_ref,
                o_ref,
                diff_sc, mexp_sc,
                *, n_valid, chunk, unroll):
    g = pl.program_id(0)
    n_pad = feat_all_ref.shape[0]
    tm = feat_blk_ref.shape[0]
    i0 = g * tm

    # ---- label differences (transposed): diff_t[j, a] = rot_diff[i0+a, j] ----
    # smooth-l1 is symmetric, so this also equals rot_diff[j, i0+a].
    # Labels are packed [green | red] -> 6 columns; green-mean + red-mean over
    # 3 components each == (sum over the 6 columns) / 3.
    n_lab = lab_all_ref.shape[1]
    diff_t = jnp.zeros((n_pad, tm), jnp.float32)
    for c in range(n_lab):                      # static 6-way unroll
        col = lab_all_ref[:, c:c + 1]           # (n_pad, 1)
        row = lab_t_blk_ref[c:c + 1, :]         # (1, tm)
        diff_t = diff_t + _smooth_l1(col - row)
    diff_t = diff_t * (1.0 / 3.0)
    diff_sc[...] = diff_t

    # ---- feature similarity (transposed): logits_t[j, a] = -||f_j - f_i|| / T
    # (i = i0 + a).  Gram on the MXU (trans_b dot_general, no transposes);
    # features kept f32 for parity with the reference (bf16 would halve
    # residency at a small precision cost).
    f_all = feat_all_ref[...]                   # (n_pad, D)
    f_blk = feat_blk_ref[...]                   # (tm, D) anchor block
    gram_t = lax.dot_general(f_all, f_blk, (((1,), (1,)), ((), ())),
                             preferred_element_type=jnp.float32)  # (n_pad, tm)
    sq_all = jnp.sum(f_all * f_all, axis=1, keepdims=True)        # (n_pad, 1)
    sq_blk = sq_row_ref[...]                                      # (1, tm)
    dist_t = jnp.sqrt(jnp.maximum(sq_all + sq_blk - 2.0 * gram_t, 0.0))
    logits_t = -dist_t / TEMPERATURE
    # Row max of the reference is the diagonal logit == 0 (all logits <= 0),
    # so the max-subtraction is a no-op and is dropped.
    exp_t = jnp.exp(logits_t)

    # Validity / off-diagonal mask (j != i, j < n, i < n).  Used transiently in
    # the prologue only; rebuilt per chunk later (never live across the k loop).
    row_j = lax.broadcasted_iota(jnp.int32, (n_pad, tm), 0)
    col_i = lax.broadcasted_iota(jnp.int32, (n_pad, tm), 1) + i0
    valid = (row_j != col_i) & (row_j < n_valid) & (col_i < n_valid)
    mexp_sc[...] = jnp.where(valid, exp_t, 0.0)

    # Positive part: sum_j valid * logits_t  -> per-anchor lane row (1, tm).
    pos_lane = jnp.sum(jnp.where(valid, logits_t, 0.0), axis=0, keepdims=True)

    # ---- RnC denominator, register-blocked over j-chunks --------------------
    # denom[j, a] = sum_{k valid, k != i} 1[diff[i,j] <= diff[i,k]] * exp[i,k].
    # The (chunk, tm) diff slice and the denom accumulator stay in vregs across
    # the k loop; each k costs 2 small row loads + cmp/select/add per vreg-row.
    n_chunks = n_pad // chunk

    def chunk_body(c, neg_lane):
        j0 = pl.multiple_of(c * chunk, chunk)
        diff_c = diff_sc[pl.ds(j0, chunk), :]              # (chunk, tm)

        def k_body(k, denom_c):
            # TODO(synk): a stride-0 sublane-broadcast load (pl.ds(k, chunk,
            # stride=0)) would remove the implicit (1,tm)->(chunk,tm)
            # broadcast; plain (1,tm) loads kept for portability.
            dk = diff_sc[pl.ds(k, 1), :]                   # (1, tm)
            mk = mexp_sc[pl.ds(k, 1), :]                   # (1, tm)
            return denom_c + jnp.where(diff_c <= dk, mk, 0.0)

        denom_c = lax.fori_loop(0, n_valid, k_body,
                                jnp.zeros((chunk, tm), jnp.float32),
                                unroll=unroll)

        # Per-chunk consumption: validity mask rebuilt from iotas, log + sum.
        rj = lax.broadcasted_iota(jnp.int32, (chunk, tm), 0) + j0
        ci = lax.broadcasted_iota(jnp.int32, (chunk, tm), 1) + i0
        vmask = (rj != ci) & (rj < n_valid) & (ci < n_valid)
        neg_c = jnp.where(vmask, jnp.log(denom_c + EPS), 0.0)
        return neg_lane + jnp.sum(neg_c, axis=0, keepdims=True)

    neg_lane = lax.fori_loop(0, n_chunks, chunk_body,
                             jnp.zeros((1, tm), jnp.float32))

    block_sum = jnp.sum(pos_lane - neg_lane, axis=1, keepdims=True)  # (1, 1)

    @pl.when(g == 0)
    def _():
        o_ref[...] = jnp.zeros_like(o_ref)

    o_ref[...] += block_sum


def _vmem_limit_bytes():
    # Generation-aware scoped-VMEM limit (v5e/v6e: 128 MiB, v7x: 64 MiB / TC).
    try:
        cap = getattr(pltpu.get_tpu_info(), "vmem_capacity_bytes", None)
        if cap:
            return int(int(cap) * 0.7)
    except Exception:
        pass
    return 48 * 1024 * 1024


def rnc_loss_rot_nonsym(rot_feat, rot_green, rot_red, *, block_m=128,
                        chunk=32, interpret=False):
    """RnC rotation loss (non-symmetric), Pallas TPU implementation.

    NOTE: unlike the PyTorch module, this always returns the loss value (it
    does NOT return None on nan/inf); callers must check finiteness.
    """
    n, d = rot_feat.shape
    if n < 2:
        raise ValueError("RnC loss needs at least 2 samples")

    # Pad the sample dim to a multiple of the anchor-block size so every tile
    # is lane-dense (TM=128 anchors per block) and the j/k slabs stay
    # (n_pad, 128); padded rows / anchors are masked inside the kernel.
    n_pad = ((n + block_m - 1) // block_m) * block_m
    pad = n_pad - n
    feat = jnp.pad(rot_feat.astype(jnp.float32), ((0, pad), (0, 0)))
    labels = jnp.concatenate([rot_green.astype(jnp.float32),
                              rot_red.astype(jnp.float32)], axis=1)  # (n, 6)
    labels = jnp.pad(labels, ((0, pad), (0, 0)))                     # (n_pad, 6)
    labels_t = labels.T                                              # (6, n_pad)
    sq_row = jnp.sum(feat * feat, axis=1)[None, :]                   # (1, n_pad)

    chunk = min(chunk, block_m)
    assert block_m % chunk == 0 and n_pad % chunk == 0

    kernel = functools.partial(_rnc_kernel, n_valid=n, chunk=chunk,
                               unroll=min(8, n))

    total = pl.pallas_call(
        kernel,
        grid=(n_pad // block_m,),
        out_shape=jax.ShapeDtypeStruct((1, 1), jnp.float32),
        in_specs=[
            # TODO(synk): the three grid-invariant residents below could be
            # single-buffered (pipeline_mode=pl.Buffered(1)) to halve their
            # VMEM footprint on v7x.
            pl.BlockSpec((n_pad, d), lambda g: (0, 0)),     # feat, all rows
            pl.BlockSpec((block_m, d), lambda g: (g, 0)),   # feat, anchor block
            pl.BlockSpec((1, block_m), lambda g: (0, g)),   # ||f||^2, anchors
            pl.BlockSpec((n_pad, 6), lambda g: (0, 0)),     # [green|red], all
            pl.BlockSpec((6, block_m), lambda g: (0, g)),   # [green|red]^T, blk
        ],
        out_specs=pl.BlockSpec((1, 1), lambda g: (0, 0)),
        scratch_shapes=[
            pltpu.VMEM((n_pad, block_m), jnp.float32),   # rot_diff^T slab
            pltpu.VMEM((n_pad, block_m), jnp.float32),   # masked exp-logits^T
        ],
        compiler_params=pltpu.CompilerParams(
            dimension_semantics=("arbitrary",),
            vmem_limit_bytes=_vmem_limit_bytes(),
        ),
        interpret=interpret,
    )(feat, feat, sq_row, labels, labels_t)

    return -total[0, 0] / (n * (n - 1))


def reference_loss(rot_feat, rot_green, rot_red):
    """Pure-JAX mirror of the PyTorch RnCLoss_rot_nonSym forward (verification)."""
    f = rot_feat.astype(jnp.float32)
    n = f.shape[0]

    def label_diff(lab):
        d = lab[:, None, :] - lab[None, :, :]
        ad = jnp.abs(d)
        sl1 = jnp.where(ad < SMOOTH_L1_BETA,
                        0.5 * d * d / SMOOTH_L1_BETA,
                        ad - 0.5 * SMOOTH_L1_BETA)
        return sl1.mean(axis=2)

    rot_diff = (label_diff(rot_green.astype(jnp.float32))
                + label_diff(rot_red.astype(jnp.float32)))

    dist = jnp.sqrt(jnp.sum((f[:, None, :] - f[None, :, :]) ** 2, axis=-1))
    logits = -dist / TEMPERATURE
    logits = logits - jnp.max(logits, axis=1, keepdims=True)
    exp_logits = jnp.exp(logits)
    offdiag = 1.0 - jnp.eye(n, dtype=jnp.float32)
    masked_exp = exp_logits * offdiag
    # Full-matrix formulation; identical to the masked-select/(n, n-1) PyTorch
    # code because diagonal terms carry zero weight (masked_exp) / zero mask.
    cmp = (rot_diff[:, :, None] <= rot_diff[:, None, :]).astype(jnp.float32)
    denom = jnp.sum(cmp * masked_exp[:, None, :], axis=2)
    per = (logits - jnp.log(denom + EPS)) * offdiag
    return -jnp.sum(per) / (n * (n - 1))


if __name__ == "__main__":
    key = jax.random.PRNGKey(0)
    k1, k2, k3 = jax.random.split(key, 3)
    n, d = 8, 32
    rot_feat = jax.random.normal(k1, (n, d), jnp.float32)
    rot_green = jax.random.normal(k2, (n, 3), jnp.float32)
    rot_red = jax.random.normal(k3, (n, 3), jnp.float32)

    loss_fn = jax.jit(rnc_loss_rot_nonsym)
    loss = jax.block_until_ready(loss_fn(rot_feat, rot_green, rot_red))

    ref = reference_loss(rot_feat, rot_green, rot_red)
    assert bool(jnp.isfinite(loss)), "loss is nan/inf"
    assert jnp.allclose(loss, ref, rtol=1e-4, atol=1e-5), (float(loss), float(ref))
    print("KERNEL_OK")
</pallas_src>

<mosaic_0001>
module attributes {stable_mosaic.version = 11 : i64} {
  func.func @_rnc_kernel(%arg0: i32, %arg1: memref<128x32xf32, #tpu.memory_space<vmem>>, %arg2: memref<128x32xf32, #tpu.memory_space<vmem>>, %arg3: memref<1x128xf32, #tpu.memory_space<vmem>>, %arg4: memref<128x6xf32, #tpu.memory_space<vmem>>, %arg5: memref<6x128xf32, #tpu.memory_space<vmem>>, %arg6: memref<1x1xf32, #tpu.memory_space<vmem>>, %arg7: memref<128x128xf32, #tpu.memory_space<vmem>>, %arg8: memref<128x128xf32, #tpu.memory_space<vmem>>) attributes {dimension_semantics = [#tpu.dimension_semantics<arbitrary>], iteration_bounds = array<i64: 1>, scalar_prefetch = 0 : i64, scratch_operands = 2 : i64, tpu.core_type = #tpu.core_type<tc>, window_params = [{pipeline_mode = #tpu.pipeline_mode<synchronous>, transform_indices = @transform_0, window_bounds = array<i64: 128, 32>}, {transform_indices = @transform_1, window_bounds = array<i64: 128, 32>}, {transform_indices = @transform_2, window_bounds = array<i64: 1, 128>}, {pipeline_mode = #tpu.pipeline_mode<synchronous>, transform_indices = @transform_3, window_bounds = array<i64: 128, 6>}, {transform_indices = @transform_4, window_bounds = array<i64: 6, 128>}, {pipeline_mode = #tpu.pipeline_mode<synchronous>, transform_indices = @transform_5, window_bounds = array<i64: 1, 1>}]} {
    %c128_i32 = arith.constant 128 : i32
    %0 = arith.muli %arg0, %c128_i32 : i32
    %cst = arith.constant 0.000000e+00 : f32
    %1 = vector.broadcast %cst : f32 to vector<128x128xf32>
    %c0 = arith.constant 0 : index
    %c0_0 = arith.constant 0 : index
    %2 = vector.load %arg4[%c0, %c0_0] : memref<128x6xf32, #tpu.memory_space<vmem>>, vector<128x1xf32>
    %c0_1 = arith.constant 0 : index
    %c0_2 = arith.constant 0 : index
    %3 = vector.load %arg5[%c0_1, %c0_2] : memref<6x128xf32, #tpu.memory_space<vmem>>, vector<1x128xf32>
    %4 = vector.broadcast %2 : vector<128x1xf32> to vector<128x128xf32>
    %5 = vector.broadcast %3 : vector<1x128xf32> to vector<128x128xf32>
    %6 = arith.subf %4, %5 : vector<128x128xf32>
    %7 = math.absf %6 : vector<128x128xf32>
    %cst_3 = arith.constant 1.000000e+00 : f32
    %8 = vector.broadcast %cst_3 : f32 to vector<128x128xf32>
    %9 = arith.cmpf olt, %7, %8 : vector<128x128xf32>
    %cst_4 = arith.constant 5.000000e-01 : f32
    %10 = vector.broadcast %cst_4 : f32 to vector<128x128xf32>
    %11 = arith.mulf %10, %6 : vector<128x128xf32>
    %12 = arith.mulf %11, %6 : vector<128x128xf32>
    %cst_5 = arith.constant 1.000000e+00 : f32
    %13 = vector.broadcast %cst_5 : f32 to vector<128x128xf32>
    %14 = arith.divf %12, %13 : vector<128x128xf32>
    %cst_6 = arith.constant 5.000000e-01 : f32
    %15 = vector.broadcast %cst_6 : f32 to vector<128x128xf32>
    %16 = arith.subf %7, %15 : vector<128x128xf32>
    %17 = arith.select %9, %14, %16 : vector<128x128xi1>, vector<128x128xf32>
    %18 = arith.addf %1, %17 : vector<128x128xf32>
    %c0_7 = arith.constant 0 : index
    %c1 = arith.constant 1 : index
    %19 = vector.load %arg4[%c0_7, %c1] : memref<128x6xf32, #tpu.memory_space<vmem>>, vector<128x1xf32>
    %c1_8 = arith.constant 1 : index
    %c0_9 = arith.constant 0 : index
    %20 = vector.load %arg5[%c1_8, %c0_9] : memref<6x128xf32, #tpu.memory_space<vmem>>, vector<1x128xf32>
    %21 = vector.broadcast %19 : vector<128x1xf32> to vector<128x128xf32>
    %22 = vector.broadcast %20 : vector<1x128xf32> to vector<128x128xf32>
    %23 = arith.subf %21, %22 : vector<128x128xf32>
    %24 = math.absf %23 : vector<128x128xf32>
    %cst_10 = arith.constant 1.000000e+00 : f32
    %25 = vector.broadcast %cst_10 : f32 to vector<128x128xf32>
    %26 = arith.cmpf olt, %24, %25 : vector<128x128xf32>
    %cst_11 = arith.constant 5.000000e-01 : f32
    %27 = vector.broadcast %cst_11 : f32 to vector<128x128xf32>
    %28 = arith.mulf %27, %23 : vector<128x128xf32>
    %29 = arith.mulf %28, %23 : vector<128x128xf32>
    %cst_12 = arith.constant 1.000000e+00 : f32
    %30 = vector.broadcast %cst_12 : f32 to vector<128x128xf32>
    %31 = arith.divf %29, %30 : vector<128x128xf32>
    %cst_13 = arith.constant 5.000000e-01 : f32
    %32 = vector.broadcast %cst_13 : f32 to vector<128x128xf32>
    %33 = arith.subf %24, %32 : vector<128x128xf32>
    %34 = arith.select %26, %31, %33 : vector<128x128xi1>, vector<128x128xf32>
    %35 = arith.addf %18, %34 : vector<128x128xf32>
    %c0_14 = arith.constant 0 : index
    %c2 = arith.constant 2 : index
    %36 = vector.load %arg4[%c0_14, %c2] : memref<128x6xf32, #tpu.memory_space<vmem>>, vector<128x1xf32>
    %c2_15 = arith.constant 2 : index
    %c0_16 = arith.constant 0 : index
    %37 = vector.load %arg5[%c2_15, %c0_16] : memref<6x128xf32, #tpu.memory_space<vmem>>, vector<1x128xf32>
    %38 = vector.broadcast %36 : vector<128x1xf32> to vector<128x128xf32>
    %39 = vector.broadcast %37 : vector<1x128xf32> to vector<128x128xf32>
    %40 = arith.subf %38, %39 : vector<128x128xf32>
    %41 = math.absf %40 : vector<128x128xf32>
    %cst_17 = arith.constant 1.000000e+00 : f32
    %42 = vector.broadcast %cst_17 : f32 to vector<128x128xf32>
    %43 = arith.cmpf olt, %41, %42 : vector<128x128xf32>
    %cst_18 = arith.constant 5.000000e-01 : f32
    %44 = vector.broadcast %cst_18 : f32 to vector<128x128xf32>
    %45 = arith.mulf %44, %40 : vector<128x128xf32>
    %46 = arith.mulf %45, %40 : vector<128x128xf32>
    %cst_19 = arith.constant 1.000000e+00 : f32
    %47 = vector.broadcast %cst_19 : f32 to vector<128x128xf32>
    %48 = arith.divf %46, %47 : vector<128x128xf32>
    %cst_20 = arith.constant 5.000000e-01 : f32
    %49 = vector.broadcast %cst_20 : f32 to vector<128x128xf32>
    %50 = arith.subf %41, %49 : vector<128x128xf32>
    %51 = arith.select %43, %48, %50 : vector<128x128xi1>, vector<128x128xf32>
    %52 = arith.addf %35, %51 : vector<128x128xf32>
    %c0_21 = arith.constant 0 : index
    %c3 = arith.constant 3 : index
    %53 = vector.load %arg4[%c0_21, %c3] : memref<128x6xf32, #tpu.memory_space<vmem>>, vector<128x1xf32>
    %c3_22 = arith.constant 3 : index
    %c0_23 = arith.constant 0 : index
    %54 = vector.load %arg5[%c3_22, %c0_23] : memref<6x128xf32, #tpu.memory_space<vmem>>, vector<1x128xf32>
    %55 = vector.broadcast %53 : vector<128x1xf32> to vector<128x128xf32>
    %56 = vector.broadcast %54 : vector<1x128xf32> to vector<128x128xf32>
    %57 = arith.subf %55, %56 : vector<128x128xf32>
    %58 = math.absf %57 : vector<128x128xf32>
    %cst_24 = arith.constant 1.000000e+00 : f32
    %59 = vector.broadcast %cst_24 : f32 to vector<128x128xf32>
    %60 = arith.cmpf olt, %58, %59 : vector<128x128xf32>
    %cst_25 = arith.constant 5.000000e-01 : f32
    %61 = vector.broadcast %cst_25 : f32 to vector<128x128xf32>
    %62 = arith.mulf %61, %57 : vector<128x128xf32>
    %63 = arith.mulf %62, %57 : vector<128x128xf32>
    %cst_26 = arith.constant 1.000000e+00 : f32
    %64 = vector.broadcast %cst_26 : f32 to vector<128x128xf32>
    %65 = arith.divf %63, %64 : vector<128x128xf32>
    %cst_27 = arith.constant 5.000000e-01 : f32
    %66 = vector.broadcast %cst_27 : f32 to vector<128x128xf32>
    %67 = arith.subf %58, %66 : vector<128x128xf32>
    %68 = arith.select %60, %65, %67 : vector<128x128xi1>, vector<128x128xf32>
    %69 = arith.addf %52, %68 : vector<128x128xf32>
    %c0_28 = arith.constant 0 : index
    %c4 = arith.constant 4 : index
    %70 = vector.load %arg4[%c0_28, %c4] : memref<128x6xf32, #tpu.memory_space<vmem>>, vector<128x1xf32>
    %c4_29 = arith.constant 4 : index
    %c0_30 = arith.constant 0 : index
    %71 = vector.load %arg5[%c4_29, %c0_30] : memref<6x128xf32, #tpu.memory_space<vmem>>, vector<1x128xf32>
    %72 = vector.broadcast %70 : vector<128x1xf32> to vector<128x128xf32>
    %73 = vector.broadcast %71 : vector<1x128xf32> to vector<128x128xf32>
    %74 = arith.subf %72, %73 : vector<128x128xf32>
    %75 = math.absf %74 : vector<128x128xf32>
    %cst_31 = arith.constant 1.000000e+00 : f32
    %76 = vector.broadcast %cst_31 : f32 to vector<128x128xf32>
    %77 = arith.cmpf olt, %75, %76 : vector<128x128xf32>
    %cst_32 = arith.constant 5.000000e-01 : f32
    %78 = vector.broadcast %cst_32 : f32 to vector<128x128xf32>
    %79 = arith.mulf %78, %74 : vector<128x128xf32>
    %80 = arith.mulf %79, %74 : vector<128x128xf32>
    %cst_33 = arith.constant 1.000000e+00 : f32
    %81 = vector.broadcast %cst_33 : f32 to vector<128x128xf32>
    %82 = arith.divf %80, %81 : vector<128x128xf32>
    %cst_34 = arith.constant 5.000000e-01 : f32
    %83 = vector.broadcast %cst_34 : f32 to vector<128x128xf32>
    %84 = arith.subf %75, %83 : vector<128x128xf32>
    %85 = arith.select %77, %82, %84 : vector<128x128xi1>, vector<128x128xf32>
    %86 = arith.addf %69, %85 : vector<128x128xf32>
    %c0_35 = arith.constant 0 : index
    %c5 = arith.constant 5 : index
    %87 = vector.load %arg4[%c0_35, %c5] : memref<128x6xf32, #tpu.memory_space<vmem>>, vector<128x1xf32>
    %c5_36 = arith.constant 5 : index
    %c0_37 = arith.constant 0 : index
    %88 = vector.load %arg5[%c5_36, %c0_37] : memref<6x128xf32, #tpu.memory_space<vmem>>, vector<1x128xf32>
    %89 = vector.broadcast %87 : vector<128x1xf32> to vector<128x128xf32>
    %90 = vector.broadcast %88 : vector<1x128xf32> to vector<128x128xf32>
    %91 = arith.subf %89, %90 : vector<128x128xf32>
    %92 = math.absf %91 : vector<128x128xf32>
    %cst_38 = arith.constant 1.000000e+00 : f32
    %93 = vector.broadcast %cst_38 : f32 to vector<128x128xf32>
    %94 = arith.cmpf olt, %92, %93 : vector<128x128xf32>
    %cst_39 = arith.constant 5.000000e-01 : f32
    %95 = vector.broadcast %cst_39 : f32 to vector<128x128xf32>
    %96 = arith.mulf %95, %91 : vector<128x128xf32>
    %97 = arith.mulf %96, %91 : vector<128x128xf32>
    %cst_40 = arith.constant 1.000000e+00 : f32
    %98 = vector.broadcast %cst_40 : f32 to vector<128x128xf32>
    %99 = arith.divf %97, %98 : vector<128x128xf32>
    %cst_41 = arith.constant 5.000000e-01 : f32
    %100 = vector.broadcast %cst_41 : f32 to vector<128x128xf32>
    %101 = arith.subf %92, %100 : vector<128x128xf32>
    %102 = arith.select %94, %99, %101 : vector<128x128xi1>, vector<128x128xf32>
    %103 = arith.addf %86, %102 : vector<128x128xf32>
    %cst_42 = arith.constant 0.333333343 : f32
    %104 = vector.broadcast %cst_42 : f32 to vector<128x128xf32>
    %105 = arith.mulf %103, %104 : vector<128x128xf32>
    %c0_43 = arith.constant 0 : index
    %c0_44 = arith.constant 0 : index
    %106 = vector.load %arg7[%c0_43, %c0_44] : memref<128x128xf32, #tpu.memory_space<vmem>>, vector<128x128xf32>
    tpu.vector_store %arg7[%c0_43, %c0_44], %105 {strides = array<i32>} : memref<128x128xf32, #tpu.memory_space<vmem>>, vector<128x128xf32>,
    %c0_45 = arith.constant 0 : index
    %c0_46 = arith.constant 0 : index
    %107 = vector.load %arg1[%c0_45, %c0_46] : memref<128x32xf32, #tpu.memory_space<vmem>>, vector<128x32xf32>
    %c0_47 = arith.constant 0 : index
    %c0_48 = arith.constant 0 : index
    %108 = vector.load %arg2[%c0_47, %c0_48] : memref<128x32xf32, #tpu.memory_space<vmem>>, vector<128x32xf32>
    %cst_49 = arith.constant dense<0.000000e+00> : vector<128x128xf32>
    %109 = tpu.matmul %107, %108, %cst_49 {dimension_numbers = #tpu.dot_dimension_numbers<[1], [1], [0], [0], [0, 0, 1, 0], [], []>} : vector<128x32xf32>, vector<128x32xf32>, vector<128x128xf32> -> vector<128x128xf32>
    %110 = arith.mulf %107, %107 : vector<128x32xf32>
    %cst_50 = arith.constant dense<0.000000e+00> : vector<128xf32>
    %111 = vector.multi_reduction <add>, %110, %cst_50 [1] : vector<128x32xf32> to vector<128xf32>
    %112 = vector.shape_cast %111 : vector<128xf32> to vector<128x1xf32>
    %c0_51 = arith.constant 0 : index
    %c0_52 = arith.constant 0 : index
    %113 = vector.load %arg3[%c0_51, %c0_52] : memref<1x128xf32, #tpu.memory_space<vmem>>, vector<1x128xf32>
    %114 = vector.broadcast %112 : vector<128x1xf32> to vector<128x128xf32>
    %115 = vector.broadcast %113 : vector<1x128xf32> to vector<128x128xf32>
    %116 = arith.addf %114, %115 : vector<128x128xf32>
    %cst_53 = arith.constant 2.000000e+00 : f32
    %117 = vector.broadcast %cst_53 : f32 to vector<128x128xf32>
    %118 = arith.mulf %117, %109 : vector<128x128xf32>
    %119 = arith.subf %116, %118 : vector<128x128xf32>
    %cst_54 = arith.constant 0.000000e+00 : f32
    %120 = vector.broadcast %cst_54 : f32 to vector<128x128xf32>
    %121 = arith.maximumf %119, %120 : vector<128x128xf32>
    %122 = math.sqrt %121 : vector<128x128xf32>
    %cst_55 = arith.constant 0.000000e+00 : f32
    %123 = vector.broadcast %cst_55 : f32 to vector<128x128xf32>
    %124 = arith.subf %123, %122 : vector<128x128xf32>
    %cst_56 = arith.constant 2.000000e+00 : f32
    %125 = vector.broadcast %cst_56 : f32 to vector<128x128xf32>
    %126 = arith.divf %124, %125 : vector<128x128xf32>
    %127 = math.exp %126 : vector<128x128xf32>
    %128 = tpu.iota {dimensions = array<i32: 0>} : vector<128x128xi32>
    %129 = tpu.iota {dimensions = array<i32: 1>} : vector<128x128xi32>
    %130 = vector.broadcast %0 : i32 to vector<128x128xi32>
    %131 = arith.addi %129, %130 : vector<128x128xi32>
    %132 = arith.cmpi ne, %128, %131 : vector<128x128xi32>
    %c8_i32 = arith.constant 8 : i32
    %133 = vector.broadcast %c8_i32 : i32 to vector<128x128xi32>
    %134 = arith.cmpi slt, %128, %133 : vector<128x128xi32>
    %135 = arith.andi %132, %134 : vector<128x128xi1>
    %c8_i32_57 = arith.constant 8 : i32
    %136 = vector.broadcast %c8_i32_57 : i32 to vector<128x128xi32>
    %137 = arith.cmpi slt, %131, %136 : vector<128x128xi32>
    %138 = arith.andi %135, %137 : vector<128x128xi1>
    %cst_58 = arith.constant 0.000000e+00 : f32
    %139 = vector.broadcast %cst_58 : f32 to vector<128x128xf32>
    %140 = arith.select %138, %127, %139 : vector<128x128xi1>, vector<128x128xf32>
    %c0_59 = arith.constant 0 : index
    %c0_60 = arith.constant 0 : index
    %141 = vector.load %arg8[%c0_59, %c0_60] : memref<128x128xf32, #tpu.memory_space<vmem>>, vector<128x128xf32>
    tpu.vector_store %arg8[%c0_59, %c0_60], %140 {strides = array<i32>} : memref<128x128xf32, #tpu.memory_space<vmem>>, vector<128x128xf32>,
    %cst_61 = arith.constant 0.000000e+00 : f32
    %142 = vector.broadcast %cst_61 : f32 to vector<128x128xf32>
    %143 = arith.select %138, %126, %142 : vector<128x128xi1>, vector<128x128xf32>
    %cst_62 = arith.constant dense<0.000000e+00> : vector<128xf32>
    %144 = vector.multi_reduction <add>, %143, %cst_62 [0] : vector<128x128xf32> to vector<128xf32>
    %145 = vector.shape_cast %144 : vector<128xf32> to vector<1x128xf32>
    %cst_63 = arith.constant 0.000000e+00 : f32
    %146 = vector.broadcast %cst_63 : f32 to vector<1x128xf32>
    %c0_i32 = arith.constant 0 : i32
    %c4_i32 = arith.constant 4 : i32
    %147 = arith.addi %c0_i32, %c4_i32 : i32
    %c1_i32 = arith.constant 1 : i32
    %148 = scf.for %arg9 = %c0_i32 to %147 step %c1_i32 iter_args(%arg10 = %146) -> (vector<1x128xf32>)  : i32 {
      %c32_i32 = arith.constant 32 : i32
      %158 = arith.muli %arg9, %c32_i32 : i32
      %159 = tpu.assume_multiple %158, 32 : i32
      %160 = arith.index_cast %159 : i32 to index
      %c0_72 = arith.constant 0 : index
      %161 = vector.load %arg7[%160, %c0_72] : memref<128x128xf32, #tpu.memory_space<vmem>>, vector<32x128xf32>
      %cst_73 = arith.constant 0.000000e+00 : f32
      %162 = vector.broadcast %cst_73 : f32 to vector<32x128xf32>
      %c0_i32_74 = arith.constant 0 : i32
      %163 = arith.index_cast %c0_i32_74 : i32 to index
      %c0_75 = arith.constant 0 : index
      %164 = vector.load %arg7[%163, %c0_75] : memref<128x128xf32, #tpu.memory_space<vmem>>, vector<1x128xf32>
      %165 = arith.index_cast %c0_i32_74 : i32 to index
      %c0_76 = arith.constant 0 : index
      %166 = vector.load %arg8[%165, %c0_76] : memref<128x128xf32, #tpu.memory_space<vmem>>, vector<1x128xf32>
      %167 = vector.broadcast %164 : vector<1x128xf32> to vector<32x128xf32>
      %168 = arith.cmpf ole, %161, %167 : vector<32x128xf32>
      %cst_77 = arith.constant 0.000000e+00 : f32
      %169 = vector.shape_cast %166 : vector<1x128xf32> to vector<1x128xf32>
      %170 = vector.broadcast %169 : vector<1x128xf32> to vector<32x128xf32>
      %171 = vector.broadcast %cst_77 : f32 to vector<32x128xf32>
      %172 = arith.select %168, %170, %171 : vector<32x128xi1>, vector<32x128xf32>
      %173 = arith.addf %162, %172 : vector<32x128xf32>
      %c1_i32_78 = arith.constant 1 : i32
      %174 = arith.index_cast %c1_i32_78 : i32 to index
      %c0_79 = arith.constant 0 : index
      %175 = vector.load %arg7[%174, %c0_79] : memref<128x128xf32, #tpu.memory_space<vmem>>, vector<1x128xf32>
      %176 = arith.index_cast %c1_i32_78 : i32 to index
      %c0_80 = arith.constant 0 : index
      %177 = vector.load %arg8[%176, %c0_80] : memref<128x128xf32, #tpu.memory_space<vmem>>, vector<1x128xf32>
      %178 = vector.broadcast %175 : vector<1x128xf32> to vector<32x128xf32>
      %179 = arith.cmpf ole, %161, %178 : vector<32x128xf32>
      %cst_81 = arith.constant 0.000000e+00 : f32
      %180 = vector.shape_cast %177 : vector<1x128xf32> to vector<1x128xf32>
      %181 = vector.broadcast %180 : vector<1x128xf32> to vector<32x128xf32>
      %182 = vector.broadcast %cst_81 : f32 to vector<32x128xf32>
      %183 = arith.select %179, %181, %182 : vector<32x128xi1>, vector<32x128xf32>
      %184 = arith.addf %173, %183 : vector<32x128xf32>
      %c2_i32 = arith.constant 2 : i32
      %185 = arith.index_cast %c2_i32 : i32 to index
      %c0_82 = arith.constant 0 : index
      %186 = vector.load %arg7[%185, %c0_82] : memref<128x128xf32, #tpu.memory_space<vmem>>, vector<1x128xf32>
      %187 = arith.index_cast %c2_i32 : i32 to index
      %c0_83 = arith.constant 0 : index
      %188 = vector.load %arg8[%187, %c0_83] : memref<128x128xf32, #tpu.memory_space<vmem>>, vector<1x128xf32>
      %189 = vector.broadcast %186 : vector<1x128xf32> to vector<32x128xf32>
      %190 = arith.cmpf ole, %161, %189 : vector<32x128xf32>
      %cst_84 = arith.constant 0.000000e+00 : f32
      %191 = vector.shape_cast %188 : vector<1x128xf32> to vector<1x128xf32>
      %192 = vector.broadcast %191 : vector<1x128xf32> to vector<32x128xf32>
      %193 = vector.broadcast %cst_84 : f32 to vector<32x128xf32>
      %194 = arith.select %190, %192, %193 : vector<32x128xi1>, vector<32x128xf32>
      %195 = arith.addf %184, %194 : vector<32x128xf32>
      %c3_i32 = arith.constant 3 : i32
      %196 = arith.index_cast %c3_i32 : i32 to index
      %c0_85 = arith.constant 0 : index
      %197 = vector.load %arg7[%196, %c0_85] : memref<128x128xf32, #tpu.memory_space<vmem>>, vector<1x128xf32>
      %198 = arith.index_cast %c3_i32 : i32 to index
      %c0_86 = arith.constant 0 : index
      %199 = vector.load %arg8[%198, %c0_86] : memref<128x128xf32, #tpu.memory_space<vmem>>, vector<1x128xf32>
      %200 = vector.broadcast %197 : vector<1x128xf32> to vector<32x128xf32>
      %201 = arith.cmpf ole, %161, %200 : vector<32x128xf32>
      %cst_87 = arith.constant 0.000000e+00 : f32
      %202 = vector.shape_cast %199 : vector<1x128xf32> to vector<1x128xf32>
      %203 = vector.broadcast %202 : vector<1x128xf32> to vector<32x128xf32>
      %204 = vector.broadcast %cst_87 : f32 to vector<32x128xf32>
      %205 = arith.select %201, %203, %204 : vector<32x128xi1>, vector<32x128xf32>
      %206 = arith.addf %195, %205 : vector<32x128xf32>
      %c4_i32_88 = arith.constant 4 : i32
      %207 = arith.index_cast %c4_i32_88 : i32 to index
      %c0_89 = arith.constant 0 : index
      %208 = vector.load %arg7[%207, %c0_89] : memref<128x128xf32, #tpu.memory_space<vmem>>, vector<1x128xf32>
      %209 = arith.index_cast %c4_i32_88 : i32 to index
      %c0_90 = arith.constant 0 : index
      %210 = vector.load %arg8[%209, %c0_90] : memref<128x128xf32, #tpu.memory_space<vmem>>, vector<1x128xf32>
      %211 = vector.broadcast %208 : vector<1x128xf32> to vector<32x128xf32>
      %212 = arith.cmpf ole, %161, %211 : vector<32x128xf32>
      %cst_91 = arith.constant 0.000000e+00 : f32
      %213 = vector.shape_cast %210 : vector<1x128xf32> to vector<1x128xf32>
      %214 = vector.broadcast %213 : vector<1x128xf32> to vector<32x128xf32>
      %215 = vector.broadcast %cst_91 : f32 to vector<32x128xf32>
      %216 = arith.select %212, %214, %215 : vector<32x128xi1>, vector<32x128xf32>
      %217 = arith.addf %206, %216 : vector<32x128xf32>
      %c5_i32 = arith.constant 5 : i32
      %218 = arith.index_cast %c5_i32 : i32 to index
      %c0_92 = arith.constant 0 : index
      %219 = vector.load %arg7[%218, %c0_92] : memref<128x128xf32, #tpu.memory_space<vmem>>, vector<1x128xf32>
      %220 = arith.index_cast %c5_i32 : i32 to index
      %c0_93 = arith.constant 0 : index
      %221 = vector.load %arg8[%220, %c0_93] : memref<128x128xf32, #tpu.memory_space<vmem>>, vector<1x128xf32>
      %222 = vector.broadcast %219 : vector<1x128xf32> to vector<32x128xf32>
      %223 = arith.cmpf ole, %161, %222 : vector<32x128xf32>
      %cst_94 = arith.constant 0.000000e+00 : f32
      %224 = vector.shape_cast %221 : vector<1x128xf32> to vector<1x128xf32>
      %225 = vector.broadcast %224 : vector<1x128xf32> to vector<32x128xf32>
      %226 = vector.broadcast %cst_94 : f32 to vector<32x128xf32>
      %227 = arith.select %223, %225, %226 : vector<32x128xi1>, vector<32x128xf32>
      %228 = arith.addf %217, %227 : vector<32x128xf32>
      %c6_i32 = arith.constant 6 : i32
      %229 = arith.index_cast %c6_i32 : i32 to index
      %c0_95 = arith.constant 0 : index
      %230 = vector.load %arg7[%229, %c0_95] : memref<128x128xf32, #tpu.memory_space<vmem>>, vector<1x128xf32>
      %231 = arith.index_cast %c6_i32 : i32 to index
      %c0_96 = arith.constant 0 : index
      %232 = vector.load %arg8[%231, %c0_96] : memref<128x128xf32, #tpu.memory_space<vmem>>, vector<1x128xf32>
      %233 = vector.broadcast %230 : vector<1x128xf32> to vector<32x128xf32>
      %234 = arith.cmpf ole, %161, %233 : vector<32x128xf32>
      %cst_97 = arith.constant 0.000000e+00 : f32
      %235 = vector.shape_cast %232 : vector<1x128xf32> to vector<1x128xf32>
      %236 = vector.broadcast %235 : vector<1x128xf32> to vector<32x128xf32>
      %237 = vector.broadcast %cst_97 : f32 to vector<32x128xf32>
      %238 = arith.select %234, %236, %237 : vector<32x128xi1>, vector<32x128xf32>
      %239 = arith.addf %228, %238 : vector<32x128xf32>
      %c7_i32 = arith.constant 7 : i32
      %240 = arith.index_cast %c7_i32 : i32 to index
      %c0_98 = arith.constant 0 : index
      %241 = vector.load %arg7[%240, %c0_98] : memref<128x128xf32, #tpu.memory_space<vmem>>, vector<1x128xf32>
      %242 = arith.index_cast %c7_i32 : i32 to index
      %c0_99 = arith.constant 0 : index
      %243 = vector.load %arg8[%242, %c0_99] : memref<128x128xf32, #tpu.memory_space<vmem>>, vector<1x128xf32>
      %244 = vector.broadcast %241 : vector<1x128xf32> to vector<32x128xf32>
      %245 = arith.cmpf ole, %161, %244 : vector<32x128xf32>
      %cst_100 = arith.constant 0.000000e+00 : f32
      %246 = vector.shape_cast %243 : vector<1x128xf32> to vector<1x128xf32>
      %247 = vector.broadcast %246 : vector<1x128xf32> to vector<32x128xf32>
      %248 = vector.broadcast %cst_100 : f32 to vector<32x128xf32>
      %249 = arith.select %245, %247, %248 : vector<32x128xi1>, vector<32x128xf32>
      %250 = arith.addf %239, %249 : vector<32x128xf32>
      %c8_i32_101 = arith.constant 8 : i32
      %251 = tpu.iota {dimensions = array<i32: 0>} : vector<32x128xi32>
      %252 = vector.broadcast %159 : i32 to vector<32x128xi32>
      %253 = arith.addi %251, %252 : vector<32x128xi32>
      %254 = tpu.iota {dimensions = array<i32: 1>} : vector<32x128xi32>
      %255 = vector.broadcast %0 : i32 to vector<32x128xi32>
      %256 = arith.addi %254, %255 : vector<32x128xi32>
      %257 = arith.cmpi ne, %253, %256 : vector<32x128xi32>
      %c8_i32_102 = arith.constant 8 : i32
      %258 = vector.broadcast %c8_i32_102 : i32 to vector<32x128xi32>
      %259 = arith.cmpi slt, %253, %258 : vector<32x128xi32>
      %260 = arith.andi %257, %259 : vector<32x128xi1>
      %c8_i32_103 = arith.constant 8 : i32
      %261 = vector.broadcast %c8_i32_103 : i32 to vector<32x128xi32>
      %262 = arith.cmpi slt, %256, %261 : vector<32x128xi32>
      %263 = arith.andi %260, %262 : vector<32x128xi1>
      %cst_104 = arith.constant 1.000000e-07 : f32
      %264 = vector.broadcast %cst_104 : f32 to vector<32x128xf32>
      %265 = arith.addf %250, %264 : vector<32x128xf32>
      %266 = math.log %265 : vector<32x128xf32>
      %cst_105 = arith.constant 0.000000e+00 : f32
      %267 = vector.broadcast %cst_105 : f32 to vector<32x128xf32>
      %268 = arith.select %263, %266, %267 : vector<32x128xi1>, vector<32x128xf32>
      %cst_106 = arith.constant dense<0.000000e+00> : vector<128xf32>
      %269 = vector.multi_reduction <add>, %268, %cst_106 [0] : vector<32x128xf32> to vector<128xf32>
      %270 = vector.shape_cast %269 : vector<128xf32> to vector<1x128xf32>
      %271 = arith.addf %arg10, %270 : vector<1x128xf32>
      scf.yield %271 : vector<1x128xf32>
    }
    %c4_i32_64 = arith.constant 4 : i32
    %149 = arith.subf %145, %148 : vector<1x128xf32>
    %cst_65 = arith.constant dense<0.000000e+00> : vector<1xf32>
    %150 = vector.multi_reduction <add>, %149, %cst_65 [1] : vector<1x128xf32> to vector<1xf32>
    %151 = vector.shape_cast %150 : vector<1xf32> to vector<1x1xf32>
    %c0_i32_66 = arith.constant 0 : i32
    %152 = arith.cmpi eq, %arg0, %c0_i32_66 : i32
    %153 = arith.extui %152 : i1 to i32
    %c0_i32_67 = arith.constant 0 : i32
    %154 = arith.cmpi ne, %153, %c0_i32_67 : i32
    scf.if %154 {
      %cst_72 = arith.constant 0.000000e+00 : f32
      %158 = vector.broadcast %cst_72 : f32 to vector<1x1xf32>
      %c0_73 = arith.constant 0 : index
      %c0_74 = arith.constant 0 : index
      %159 = vector.load %arg6[%c0_73, %c0_74] : memref<1x1xf32, #tpu.memory_space<vmem>>, vector<1x1xf32>
      tpu.vector_store %arg6[%c0_73, %c0_74], %158 {strides = array<i32>} : memref<1x1xf32, #tpu.memory_space<vmem>>, vector<1x1xf32>,
    } else {
    }
    %c0_68 = arith.constant 0 : index
    %c0_69 = arith.constant 0 : index
    %155 = vector.load %arg6[%c0_68, %c0_69] : memref<1x1xf32, #tpu.memory_space<vmem>>, vector<1x1xf32>
    %156 = arith.addf %155, %151 : vector<1x1xf32>
    %c0_70 = arith.constant 0 : index
    %c0_71 = arith.constant 0 : index
    %157 = vector.load %arg6[%c0_70, %c0_71] : memref<1x1xf32, #tpu.memory_space<vmem>>, vector<1x1xf32>
    tpu.vector_store %arg6[%c0_70, %c0_71], %156 {strides = array<i32>} : memref<1x1xf32, #tpu.memory_space<vmem>>, vector<1x1xf32>,
    return
  }
  func.func @transform_0(%arg0: i32) -> (i32, i32) {
    %c0_i32 = arith.constant 0 : i32
    %c0_i32_0 = arith.constant 0 : i32
    %c0_i32_1 = arith.constant 0 : i32
    return %c0_i32, %c0_i32_0 : i32, i32
  }
  func.func @transform_1(%arg0: i32) -> (i32, i32) {
    %c0_i32 = arith.constant 0 : i32
    %c0_i32_0 = arith.constant 0 : i32
    return %arg0, %c0_i32 : i32, i32
  }
  func.func @transform_2(%arg0: i32) -> (i32, i32) {
    %c0_i32 = arith.constant 0 : i32
    %c0_i32_0 = arith.constant 0 : i32
    return %c0_i32, %arg0 : i32, i32
  }
  func.func @transform_3(%arg0: i32) -> (i32, i32) {
    %c0_i32 = arith.constant 0 : i32
    %c0_i32_0 = arith.constant 0 : i32
    %c0_i32_1 = arith.constant 0 : i32
    return %c0_i32, %c0_i32_0 : i32, i32
  }
  func.func @transform_4(%arg0: i32) -> (i32, i32) {
    %c0_i32 = arith.constant 0 : i32
    %c0_i32_0 = arith.constant 0 : i32
    return %c0_i32, %arg0 : i32, i32
  }
  func.func @transform_5(%arg0: i32) -> (i32, i32) {
    %c0_i32 = arith.constant 0 : i32
    %c0_i32_0 = arith.constant 0 : i32
    %c0_i32_1 = arith.constant 0 : i32
    return %c0_i32, %c0_i32_0 : i32, i32
  }
}

</mosaic_0001>

<bundles_post_ra>
// kernel: rnc_loss_rot_nonsym.1
= control target key start
LH: loop header
LB: loop body
LE: loop exit
PB: predicated region body
PF: predicated region fallthrough
CT: control target
= control target key end

     0   :  { %v2680_v2 = vmov 0   ;;  %vm1300_vm0 = vcmask 261120   ;;  %s4140_s0 = inlined_call_operand.vmem [shape: f32[128,32], index: 0, kind: input, shape index: {}, may-alias: {0,1}]   ;;  %s4141_s1 = inlined_call_operand.vmem [shape: f32[128,32], index: 1, kind: input, shape index: {}, may-alias: {0,1}]   ;;  %s4142_s2 = inlined_call_operand.vmem [shape: f32[1,128], index: 2, kind: input, shape index: {}]   ;;  %s4143_s3 = inlined_call_operand.vmem [shape: f32[128,6], index: 3, kind: input, shape index: {}]   ;;  %s4144_s4 = inlined_call_operand.vmem [shape: f32[6,128], index: 4, kind: input, shape index: {}]   ;;  %s4145_s5 = inlined_call_operand.hbm [shape: f32[1,1], index: 5, kind: output, shape index: {}]  }
   0x1   :  { %v2721_v0 = vld [vmem:[%s4143_s3 + $0x10] sm:$0xff]  ;;  %v2726_v1 = vld [vmem:[%s4143_s3] sm:$0xff]  ;;  %2611 = vset.pattern.permute.xlu1 %v2680_v2  ;;  %2610 = vset.pattern.permute.xlu0 %v2680_v2  ;;  %v2733_v3 = vld [vmem:[%s4143_s3 + $0x18] sm:$0xff] }
   0x2   :  { %51 = vperm.xlu1 %2611, %v2721_v0   ;;  %41 = vperm.xlu0 %2610, %v2726_v1   ;;  %v2738_v4 = vld [vmem:[%s4143_s3 + $0x8] sm:$0xff] }
   0x3   :  { %10 = vsyncpa [#allocation5], 0  ;;  %v1284_v5 = vld [vmem:[%s4141_s1] sm:$0xff]  ;;  %v1285_v6 = vld [vmem:[%s4141_s1 + $0x8] sm:$0xff]  ;;  %v2681_v35 = vmov 1   ;;  %v2682_v45 = vmov 2  }
   0x4   :  { %vm2750_vm1 = vmpackc.low %vm1300_vm0, %vm1300_vm0  ;;  %v1286_v8 = vld [vmem:[%s4141_s1 + $0x10] sm:$0xff]  ;;  %v2760_v9 = vld [vmem:[%s4143_s3 + $0x28] sm:$0xff]  ;;  %v2522_v11 = vpack.c.bf16 %v1285_v6, %v1284_v5  ;;  %v2683_v60 = vmov 3   ;;  %v2684_v62 = vmov 4  }
   0x5   :  { %4171 = vst [vmem:[#allocation7_spill] sm:$0xff] %v2760_v9  ;;  %v2765_v10 = vld [vmem:[%s4143_s3 + $0x20] sm:$0xff]  ;;  %v1287_v12 = vld [vmem:[%s4141_s1 + $0x18] sm:$0xff]  ;;  %v2784_v15 = vld [vmem:[%s4143_s3 + $0x30] sm:$0xff] }
   0x6   :  { %56 = vperm.xlu1 %2611, %v2733_v3   ;;  %46 = vperm.xlu0 %2610, %v2738_v4   ;;  %v2528_v13 = vpack.c.bf16 %v1287_v12, %v1286_v8  ;;  %v2779_v14 = vld [vmem:[%s4143_s3 + $0x38] sm:$0xff]  ;;  %v2793_v16 = vld [vmem:[%s4140_s0] sm:$0xff]  ;;  %v1289_v18 = vld [vmem:[%s4141_s1 + $0x28] sm:$0xff] }
   0x7   :  { %2524 = vmatprep.subr.msk.bf16.mxu0 %vm2750_vm1, %v2522_v11  ;;  %2570 = vmatprep.subr.msk.bf16.mxu1 %vm2750_vm1, %v2522_v11  ;;  %4172 = vst [vmem:[#allocation8_spill] sm:$0xff] %v2779_v14  ;;  %v1288_v17 = vld [vmem:[%s4141_s1 + $0x20] sm:$0xff]  ;;  %v2812_v19 = vld [vmem:[%s4143_s3 + $0x48] sm:$0xff]  ;;  %v2827_v23 = vld [vmem:[%s4143_s3 + $0x58] sm:$0xff] }
   0x8   :  { %2527 = vmatpush3.bf16.xpose.msk.msra.mxu0 %vm2750_vm1, %v2522_v11  ;;  %2578 = vmatpush3.bf16.xpose.msk.msra.mxu1 %vm2750_vm1, %v2522_v11  ;;  %4173 = vst [vmem:[#allocation9_spill] sm:$0xff] %v2812_v19  ;;  %v2817_v20 = vld [vmem:[%s4143_s3 + $0x40] sm:$0xff]  ;;  %v2534_v21 = vpack.c.bf16 %v1289_v18, %v1288_v17  ;;  %4174 = vst [vmem:[#allocation10_spill] sm:$0xff] %v2827_v23  ;;  %v2832_v24 = vld [vmem:[%s4143_s3 + $0x50] sm:$0xff] }
   0x9   :  { %2530 = vmatprep.subr.msk.bf16.mxu0 %vm2750_vm1, %v2528_v13  ;;  %2571 = vmatprep.subr.msk.bf16.mxu1 %vm2750_vm1, %v2528_v13  ;;  %v1276_v22 = vld [vmem:[%s4140_s0 + $0x40] sm:$0xff]  ;;  %v1290_v25 = vld [vmem:[%s4141_s1 + $0x30] sm:$0xff]  ;;  %v1291_v26 = vld [vmem:[%s4141_s1 + $0x38] sm:$0xff] }
   0xa   :  { %66 = vperm.xlu1 %2611, %v2760_v9   ;;  %61 = vperm.xlu0 %2610, %v2765_v10   ;;  %v2854_v27 = vld [vmem:[%s4143_s3 + $0x68] sm:$0xff]  ;;  %v2859_v28 = vld [vmem:[%s4143_s3 + $0x60] sm:$0xff]  ;;  %v2540_v29 = vpack.c.bf16 %v1291_v26, %v1290_v25  ;;  %v2866_v30 = vld [vmem:[%s4143_s3 + $0x78] sm:$0xff] }
   0xb   :  { %2498 = vmatprep.mubr.msk.f32.mxu0 %vm1300_vm0, %v2793_v16  ;;  %2510 = vmatprep.mubr.msk.f32.mxu1 %vm1300_vm0, %v1276_v22  ;;  %4175 = vst [vmem:[#allocation11_spill] sm:$0xff] %v2854_v27  ;;  %4176 = vst [vmem:[#allocation12_spill] sm:$0xff] %v2866_v30  ;;  %v2871_v31 = vld [vmem:[%s4143_s3 + $0x70] sm:$0xff]  ;;  %v1292_v32 = vld [vmem:[%s4141_s1 + $0x40] sm:$0xff] }
   0xc   :  { %v1293_v33 = vld [vmem:[%s4141_s1 + $0x48] sm:$0xff]  ;;  %v1294_v36 = vld [vmem:[%s4141_s1 + $0x50] sm:$0xff]  ;;  %v1295_v37 = vld [vmem:[%s4141_s1 + $0x58] sm:$0xff] }
   0xd   :  { %v2546_v34 = vpack.c.bf16 %v1293_v33, %v1292_v32  ;;  %v2552_v38 = vpack.c.bf16 %v1295_v37, %v1294_v36  ;;  %v1296_v39 = vld [vmem:[%s4141_s1 + $0x60] sm:$0xff]  ;;  %v1297_v40 = vld [vmem:[%s4141_s1 + $0x68] sm:$0xff]  ;;  %v1298_v42 = vld [vmem:[%s4141_s1 + $0x70] sm:$0xff] }
   0xe   :  { %76 = vperm.xlu1 %2611, %v2779_v14   ;;  %71 = vperm.xlu0 %2610, %v2784_v15   ;;  %v2558_v41 = vpack.c.bf16 %v1297_v40, %v1296_v39  ;;  %v1299_v43 = vld [vmem:[%s4141_s1 + $0x78] sm:$0xff]  ;;  %v1269_v46 = vld [vmem:[%s4140_s0 + $0x8] sm:$0xff]  ;;  %v1270_v48 = vld [vmem:[%s4140_s0 + $0x10] sm:$0xff] }
   0xf   :  { %v2564_v44 = vpack.c.bf16 %v1299_v43, %v1298_v42  ;;  %v1277_v47 = vld [vmem:[%s4140_s0 + $0x48] sm:$0xff]  ;;  %v1278_v49 = vld [vmem:[%s4140_s0 + $0x50] sm:$0xff]  ;;  %v1271_v50 = vld [vmem:[%s4140_s0 + $0x18] sm:$0xff] }
  0x10   :  { %2533 = vmatpush3.bf16.xpose.msk.msra.mxu0 %vm2750_vm1, %v2528_v13  ;;  %2579 = vmatpush3.bf16.xpose.msk.msra.mxu1 %vm2750_vm1, %v2528_v13  ;;  %v1279_v51 = vld [vmem:[%s4140_s0 + $0x58] sm:$0xff]  ;;  %v1272_v52 = vld [vmem:[%s4140_s0 + $0x20] sm:$0xff]  ;;  %v1273_v54 = vld [vmem:[%s4140_s0 + $0x28] sm:$0xff] }
  0x11   :  { %2536 = vmatprep.subr.msk.bf16.mxu0 %vm2750_vm1, %v2534_v21  ;;  %2572 = vmatprep.subr.msk.bf16.mxu1 %vm2750_vm1, %v2534_v21  ;;  %v1280_v53 = vld [vmem:[%s4140_s0 + $0x60] sm:$0xff]  ;;  %v1281_v55 = vld [vmem:[%s4140_s0 + $0x68] sm:$0xff]  ;;  %v1274_v56 = vld [vmem:[%s4140_s0 + $0x30] sm:$0xff] }
  0x12   :  { %86 = vperm.xlu1 %2611, %v2812_v19   ;;  %81 = vperm.xlu0 %2610, %v2817_v20   ;;  %v1282_v57 = vld [vmem:[%s4140_s0 + $0x70] sm:$0xff]  ;;  %v1275_v58 = vld [vmem:[%s4140_s0 + $0x38] sm:$0xff]  ;;  %v3050_v2 = vld [vmem:[%s4144_s4] ss:$0 sm:$0xff] }
  0x13   :  { %v1283_v59 = vld [vmem:[%s4140_s0 + $0x78] sm:$0xff] }
  0x16   :  { %96 = vperm.xlu1 %2611, %v2827_v23   ;;  %91 = vperm.xlu0 %2610, %v2832_v24  }
  0x18   :  { %2539 = vmatpush3.bf16.xpose.msk.msra.mxu0 %vm2750_vm1, %v2534_v21  ;;  %2580 = vmatpush3.bf16.xpose.msk.msra.mxu1 %vm2750_vm1, %v2534_v21 }
  0x19   :  { %2542 = vmatprep.subr.msk.bf16.mxu0 %vm2750_vm1, %v2540_v29  ;;  %2573 = vmatprep.subr.msk.bf16.mxu1 %vm2750_vm1, %v2540_v29 }
  0x1a   :  { %106 = vperm.xlu1 %2611, %v2854_v27   ;;  %101 = vperm.xlu0 %2610, %v2859_v28  }
  0x1e   :  { %116 = vperm.xlu1 %2611, %v2866_v30   ;;  %111 = vperm.xlu0 %2610, %v2871_v31  }
  0x20   :  { %2545 = vmatpush3.bf16.xpose.msk.msra.mxu0 %vm2750_vm1, %v2540_v29  ;;  %2581 = vmatpush3.bf16.xpose.msk.msra.mxu1 %vm2750_vm1, %v2540_v29 }
  0x21   :  { %2548 = vmatprep.subr.msk.bf16.mxu0 %vm2750_vm1, %v2546_v34  ;;  %2574 = vmatprep.subr.msk.bf16.mxu1 %vm2750_vm1, %v2546_v34 }
  0x22   :  { %2613 = vset.pattern.permute.xlu1 %v2681_v35  ;;  %2612 = vset.pattern.permute.xlu0 %v2681_v35 }
  0x23   :  { %257 = vperm.xlu1 %2613, %v2738_v4   ;;  %253 = vperm.xlu0 %2612, %v2726_v1  }
  0x27   :  { %261 = vperm.xlu1 %2613, %v2721_v0   ;;  %265 = vperm.xlu0 %2612, %v2733_v3  }
  0x28   :  { %2551 = vmatpush3.bf16.xpose.msk.msra.mxu0 %vm2750_vm1, %v2546_v34  ;;  %2582 = vmatpush3.bf16.xpose.msk.msra.mxu1 %vm2750_vm1, %v2546_v34 }
  0x29   :  { %2554 = vmatprep.subr.msk.bf16.mxu0 %vm2750_vm1, %v2552_v38  ;;  %2575 = vmatprep.subr.msk.bf16.mxu1 %vm2750_vm1, %v2552_v38 }
  0x2b   :  { %269 = vperm.xlu1 %2613, %v2765_v10   ;;  %273 = vperm.xlu0 %2612, %v2760_v9  }
  0x2f   :  { %277 = vperm.xlu1 %2613, %v2784_v15   ;;  %281 = vperm.xlu0 %2612, %v2779_v14  }
  0x30   :  { %2557 = vmatpush3.bf16.xpose.msk.msra.mxu0 %vm2750_vm1, %v2552_v38  ;;  %2583 = vmatpush3.bf16.xpose.msk.msra.mxu1 %vm2750_vm1, %v2552_v38 }
  0x31   :  { %2560 = vmatprep.subr.msk.bf16.mxu0 %vm2750_vm1, %v2558_v41  ;;  %2576 = vmatprep.subr.msk.bf16.mxu1 %vm2750_vm1, %v2558_v41 }
  0x33   :  { %285 = vperm.xlu1 %2613, %v2817_v20   ;;  %289 = vperm.xlu0 %2612, %v2812_v19  }
  0x37   :  { %293 = vperm.xlu1 %2613, %v2832_v24   ;;  %297 = vperm.xlu0 %2612, %v2827_v23  }
  0x38   :  { %2563 = vmatpush3.bf16.xpose.msk.msra.mxu0 %vm2750_vm1, %v2558_v41  ;;  %2584 = vmatpush3.bf16.xpose.msk.msra.mxu1 %vm2750_vm1, %v2558_v41 }
  0x39   :  { %2566 = vmatprep.subr.msk.bf16.mxu0 %vm2750_vm1, %v2564_v44  ;;  %2577 = vmatprep.subr.msk.bf16.mxu1 %vm2750_vm1, %v2564_v44 }
  0x3b   :  { %301 = vperm.xlu1 %2613, %v2859_v28   ;;  %305 = vperm.xlu0 %2612, %v2854_v27  }
  0x3f   :  { %309 = vperm.xlu1 %2613, %v2871_v31   ;;  %313 = vperm.xlu0 %2612, %v2866_v30  }
  0x40   :  { %2569 = vmatpush3.bf16.xpose.msk.msra.mxu0 %vm2750_vm1, %v2564_v44  ;;  %2585 = vmatpush3.bf16.xpose.msk.msra.mxu1 %vm2750_vm1, %v2564_v44 }
  0x43   :  { %2614 = vset.pattern.permute.xlu1 %v2682_v45  ;;  %2615 = vset.pattern.permute.xlu0 %v2682_v45 }
  0x44   :  { %450 = vperm.xlu1 %2614, %v2726_v1   ;;  %454 = vperm.xlu0 %2615, %v2738_v4  }
  0x47   :  { %2499 = vmatmul.mubr.msk.f32.vlgmr.msra.gmra.mrb[0].mxu0 %vm1300_vm0, %v1269_v46  ;;  %2511 = vmatmul.mubr.msk.f32.vlgmr.msra.gmra.mrb[0].mxu1 %vm1300_vm0, %v1277_v47 }
  0x48   :  { %458 = vperm.xlu1 %2614, %v2721_v0   ;;  %466 = vperm.xlu0 %2615, %v2765_v10  }
  0x49   :  { %2501 = vmatprep.mubr.msk.f32.mxu0 %vm1300_vm0, %v1270_v48  ;;  %2513 = vmatprep.mubr.msk.f32.mxu1 %vm1300_vm0, %v1278_v49 }
  0x4b   :  { %2502 = vmatmul.mubr.msk.f32.gmra.mrb[2].mxu0 %vm1300_vm0, %v1271_v50  ;;  %2514 = vmatmul.mubr.msk.f32.gmra.mrb[2].mxu1 %vm1300_vm0, %v1279_v51 }
  0x4c   :  { %462 = vperm.xlu1 %2614, %v2733_v3   ;;  %474 = vperm.xlu0 %2615, %v2784_v15  }
  0x4d   :  { %2504 = vmatprep.mubr.msk.f32.mxu0 %vm1300_vm0, %v1272_v52  ;;  %2516 = vmatprep.mubr.msk.f32.mxu1 %vm1300_vm0, %v1280_v53 }
  0x4f   :  { %2505 = vmatmul.mubr.msk.f32.gmra.mrb[4].mxu0 %vm1300_vm0, %v1273_v54  ;;  %2517 = vmatmul.mubr.msk.f32.gmra.mrb[4].mxu1 %vm1300_vm0, %v1281_v55 }
  0x50   :  { %470 = vperm.xlu1 %2614, %v2760_v9   ;;  %482 = vperm.xlu0 %2615, %v2817_v20  }
  0x51   :  { %2507 = vmatprep.mubr.msk.f32.mxu0 %vm1300_vm0, %v1274_v56  ;;  %2519 = vmatprep.mubr.msk.f32.mxu1 %vm1300_vm0, %v1282_v57 }
  0x53   :  { %2508 = vmatmul.mubr.msk.f32.gmra.mrb[6].mxu0 %vm1300_vm0, %v1275_v58  ;;  %2520 = vmatmul.mubr.msk.f32.gmra.mrb[6].mxu1 %vm1300_vm0, %v1283_v59 }
  0x54   :  { %478 = vperm.xlu1 %2614, %v2779_v14   ;;  %490 = vperm.xlu0 %2615, %v2832_v24  }
  0x58   :  { %486 = vperm.xlu1 %2614, %v2812_v19   ;;  %498 = vperm.xlu0 %2615, %v2859_v28  }
  0x5c   :  { %494 = vperm.xlu1 %2614, %v2827_v23   ;;  %506 = vperm.xlu0 %2615, %v2871_v31  }
  0x60   :  { %502 = vperm.xlu1 %2614, %v2854_v27   ;;  %2616 = vset.pattern.permute.xlu0 %v2683_v60 }
  0x61   :  { %647 = vperm.xlu0 %2616, %v2726_v1  }
  0x64   :  { %510 = vperm.xlu1 %2614, %v2866_v30  }
  0x65   :  { %659 = vperm.xlu0 %2616, %v2733_v3  }
  0x68   :  { %2617 = vset.pattern.permute.xlu1 %v2683_v60 }
  0x69   :  { %651 = vperm.xlu1 %2617, %v2738_v4   ;;  %667 = vperm.xlu0 %2616, %v2760_v9  }
  0x6d   :  { %655 = vperm.xlu1 %2617, %v2721_v0   ;;  %675 = vperm.xlu0 %2616, %v2779_v14  }
  0x71   :  { %663 = vperm.xlu1 %2617, %v2765_v10   ;;  %683 = vperm.xlu0 %2616, %v2812_v19  }
  0x75   :  { %671 = vperm.xlu1 %2617, %v2784_v15   ;;  %691 = vperm.xlu0 %2616, %v2827_v23  }
  0x79   :  { %679 = vperm.xlu1 %2617, %v2817_v20   ;;  %699 = vperm.xlu0 %2616, %v2854_v27  }
  0x7d   :  { %687 = vperm.xlu1 %2617, %v2832_v24   ;;  %707 = vperm.xlu0 %2616, %v2866_v30  }
  0x81   :  { %v52_v61 = vpop.permute.xlu1 %51  ;;  %695 = vperm.xlu1 %2617, %v2859_v28   ;;  %2619 = vset.pattern.permute.xlu0 %v2684_v62  ;;  %v42_v63 = vpop.permute.xlu0 %41 }
  0x82   :  { %848 = vperm.xlu0 %2619, %v2738_v4   ;;  %v125_v7 = vsub.f32 %v52_v61, %v3050_v2  ;;  %v123_v12 = vsub.f32 %v42_v63, %v3050_v2  ;;  %v1542_v4 = vmul.f32 %v2793_v16, %v2793_v16 }
  0x84   :  { %v141_v17 = vand.u32 2147483647, %v125_v7  ;;  %v173_v21 = vmul.f32 0.5, %v125_v7  ;;  %v139_v29 = vand.u32 2147483647, %v123_v12  ;;  %v171_v32 = vmul.f32 0.5, %v123_v12 }
  0x85   :  { %v57_v5 = vpop.permute.xlu1 %56  ;;  %703 = vperm.xlu1 %2617, %v2871_v31   ;;  %v47_v6 = vpop.permute.xlu0 %46  ;;  %v3066_v16 = vsel %vm1300_vm0, %v1542_v4, 0.0 }
  0x86   :  { %860 = vperm.xlu0 %2619, %v2765_v10   ;;  %v126_v13 = vsub.f32 %v57_v5, %v3050_v2  ;;  %v124_v18 = vsub.f32 %v47_v6, %v3050_v2  ;;  %vm3068_vm2 = vcmp.lt.f32.partialorder %v141_v17, 1.0  ;;  %v3075_v38 = vmul.f32 %v173_v21, %v125_v7 }
  0x87   :  { %v3077_v39 = vadd.f32 -0.5, %v141_v17  ;;  %vm3079_vm3 = vcmp.lt.f32.partialorder %v139_v29, 1.0  ;;  %v3083_v44 = vmul.f32 %v171_v32, %v123_v12  ;;  %v3089_v47 = vadd.f32 -0.5, %v139_v29 }
  0x88   :  { %v174_v33 = vmul.f32 0.5, %v126_v13  ;;  %v140_v35 = vand.u32 2147483647, %v124_v18  ;;  %v172_v36 = vmul.f32 0.5, %v124_v18  ;;  %v4147_v17 = vmov 5  }
  0x89   :  { %v67_v8 = vpop.permute.xlu1 %66  ;;  %2618 = vset.pattern.permute.xlu1 %v2684_v62  ;;  %v62_v11 = vpop.permute.xlu0 %61 }
  0x8a   :  { %844 = vperm.xlu1 %2618, %v2726_v1   ;;  %868 = vperm.xlu0 %2619, %v2784_v15   ;;  %v128_v22 = vsub.f32 %v67_v8, %v3050_v2  ;;  %v142_v15 = vand.u32 2147483647, %v126_v13  ;;  %v3073_v37 = vsub.f32 %v62_v11, %v3050_v2  ;;  %v3095_v49 = vmul.f32 %v174_v33, %v126_v13 }
  0x8b   :  { %v3099_v51 = vmul.f32 %v172_v36, %v124_v18  ;;  %v3101_v52 = vadd.f32 -0.5, %v140_v35  ;;  %vm3105_vm5 = vcmp.lt.f32.partialorder %v140_v35, 1.0 }
  0x8c   :  { %4179 = vst [vmem:[#allocation13_spill] sm:$0xff] %v3073_v37  ;;  %v144_v40 = vand.u32 2147483647, %v128_v22  ;;  %vm3091_vm4 = vcmp.lt.f32.partialorder %v142_v15, 1.0  ;;  %v3097_v50 = vadd.f32 -0.5, %v142_v15  ;;  %v175_v53 = vmul.f32 0.5, %v3073_v37 }
  0x8d   :  { %v77_v25 = vpop.permute.xlu1 %76  ;;  %v72_v26 = vpop.permute.xlu0 %71  ;;  %v4146_v58 = vand.u32 2147483647, %v3073_v37 }
  0x8e   :  { %852 = vperm.xlu1 %2618, %v2721_v0   ;;  %876 = vperm.xlu0 %2619, %v2817_v20   ;;  %v176_v20 = vmul.f32 0.5, %v128_v22  ;;  %v130_v45 = vsub.f32 %v77_v25, %v3050_v2  ;;  %v129_v46 = vsub.f32 %v72_v26, %v3050_v2  ;;  %v3111_v57 = vadd.f32 -0.5, %v144_v40 }
  0x8f   :  { %vm3114_vm6 = vcmp.lt.f32.partialorder %v144_v40, 1.0  ;;  %v3138_v4 = vmul.f32 %v175_v53, %v3073_v37  ;;  %v3146_v18 = vadd.f32 -0.5, %v4146_v58 }
  0x90   :  { %v3109_v56 = vmul.f32 %v176_v20, %v128_v22  ;;  %v146_v62 = vand.u32 2147483647, %v130_v45  ;;  %v178_v63 = vmul.f32 0.5, %v130_v45  ;;  %v177_v5 = vmul.f32 0.5, %v129_v46 }
  0x91   :  { %v87_v41 = vpop.permute.xlu1 %86  ;;  %v82_v42 = vpop.permute.xlu0 %81  ;;  %v145_v8 = vand.u32 2147483647, %v129_v46  ;;  %4188 = vst [vmem:[#allocation14_spill] sm:$0xff] %v3138_v4  ;;  %4189 = vst [vmem:[#allocation15_spill] sm:$0xff] %v3146_v18 }
  0x92   :  { %856 = vperm.xlu1 %2618, %v2733_v3   ;;  %880 = vperm.xlu0 %2619, %v2812_v19   ;;  %v132_v54 = vsub.f32 %v87_v41, %v3050_v2  ;;  %v131_v11 = vsub.f32 %v82_v42, %v3050_v2  ;;  %v3149_v29 = vmul.f32 %v178_v63, %v130_v45  ;;  %v3151_v32 = vadd.f32 -0.5, %v146_v62 }
  0x93   :  { %v3153_v15 = vmul.f32 %v177_v5, %v129_v46  ;;  %v3158_v35 = vadd.f32 -0.5, %v145_v8  ;;  %vm3162_vm7 = vcmp.lt.f32.partialorder %v146_v62, 1.0  ;;  %vm3166_vm8 = vcmp.lt.f32.partialorder %v145_v8, 1.0 }
  0x94   :  { %v148_v13 = vand.u32 2147483647, %v132_v54  ;;  %v180_v21 = vmul.f32 0.5, %v132_v54  ;;  %v147_v36 = vand.u32 2147483647, %v131_v11  ;;  %v179_v46 = vmul.f32 0.5, %v131_v11 }
  0x95   :  { %v97_v59 = vpop.permute.xlu1 %96  ;;  %v92_v60 = vpop.permute.xlu0 %91 }
  0x96   :  { %864 = vperm.xlu1 %2618, %v2760_v9   ;;  %884 = vperm.xlu0 %2619, %v2832_v24   ;;  %v134_v22 = vsub.f32 %v97_v59, %v3050_v2  ;;  %v133_v33 = vsub.f32 %v92_v60, %v3050_v2  ;;  %vm3170_vm9 = vcmp.lt.f32.partialorder %v148_v13, 1.0  ;;  %v3174_v53 = vmul.f32 %v180_v21, %v132_v54 }
  0x97   :  { %v3176_v59 = vadd.f32 -0.5, %v148_v13  ;;  %vm3188_vm10 = vcmp.lt.f32.partialorder %v147_v36, 1.0  ;;  %v3192_v24 = vmul.f32 %v179_v46, %v131_v11  ;;  %v3212_v11 = vld [vmem:[%s4144_s4 + $0x1] ss:$0 sm:$0xff] }
  0x98   :  { %v150_v60 = vand.u32 2147483647, %v134_v22  ;;  %v182_v63 = vmul.f32 0.5, %v134_v22 }
  0x99   :  { %v107_v25 = vpop.permute.xlu1 %106  ;;  %v102_v26 = vpop.permute.xlu0 %101 }
  0x9a   :  { %872 = vperm.xlu1 %2618, %v2779_v14   ;;  %888 = vperm.xlu0 %2619, %v2827_v23   ;;  %v136_v40 = vsub.f32 %v107_v25, %v3050_v2  ;;  %v135_v20 = vsub.f32 %v102_v26, %v3050_v2  ;;  %v149_v25 = vand.u32 2147483647, %v133_v33  ;;  %v181_v26 = vmul.f32 0.5, %v133_v33 }
  0x9b   :  { %vm3201_vm11 = vcmp.lt.f32.partialorder %v150_v60, 1.0  ;;  %v3205_v13 = vmul.f32 %v182_v63, %v134_v22  ;;  %v3207_v4 = vadd.f32 -0.5, %v150_v60  ;;  %v4209_v63 = vmov 0 }
  0x9c   :  { %v152_v58 = vand.u32 2147483647, %v136_v40  ;;  %v184_v8 = vmul.f32 0.5, %v136_v40  ;;  %v183_v7 = vmul.f32 0.5, %v135_v20  ;;  %v151_v12 = vand.u32 2147483647, %v135_v20 }
  0x9d   :  { %v117_v5 = vpop.permute.xlu1 %116  ;;  %v112_v62 = vpop.permute.xlu0 %111  ;;  %4201 = vst [vmem:[#allocation17_spill] sm:$0xff] %v3205_v13  ;;  %4202 = vst [vmem:[#allocation18_spill] sm:$0xff] %v3207_v4  ;;  %v3216_v46 = vadd.f32 -0.5, %v149_v25  ;;  %vm3223_vm12 = vcmp.lt.f32.partialorder %v149_v25, 1.0 }
  0x9e   :  { %892 = vperm.xlu0 %2619, %v2859_v28   ;;  %2621 = vset.pattern.permute.xlu1 %v4147_v17  ;;  %v3194_v28 = vadd.f32 -0.5, %v147_v36  ;;  %v138_v6 = vsub.f32 %v117_v5, %v3050_v2  ;;  %v4198_v17 = vmov 0  ;;  %v3214_v36 = vmul.f32 %v181_v26, %v133_v33 }
  0x9f   :  { %v4199_v17 = vsel %vm3201_vm11, 4294967295, %v4198_v17  ;;  %4204 = vst [vmem:[#allocation20_spill] sm:$0xff] %v3216_v46  ;;  %v3218_v5 = vmul.f32 %v184_v8, %v136_v40  ;;  %v3220_v54 = vadd.f32 -0.5, %v152_v58  ;;  %vm3227_vm13 = vcmp.lt.f32.partialorder %v152_v58, 1.0 }
  0xa0   :  { %4200 = vst [vmem:[#allocation16_spill] sm:$0xff] %v4199_v17  ;;  %4203 = vst [vmem:[#allocation19_spill] sm:$0xff] %v3214_v36  ;;  %v4210_v63 = vsel %vm3227_vm13, 4294967295, %v4209_v63  ;;  %v3231_v33 = vmul.f32 %v183_v7, %v135_v20  ;;  %v137_v26 = vsub.f32 %v112_v62, %v3050_v2  ;;  %v3234_v40 = vadd.f32 -0.5, %v151_v12 }
  0xa1   :  { %4205 = vst [vmem:[#allocation21_spill] sm:$0xff] %v3218_v5  ;;  %4206 = vst [vmem:[#allocation22_spill] sm:$0xff] %v3220_v54  ;;  %v154_v8 = vand.u32 2147483647, %v138_v6  ;;  %v186_v23 = vmul.f32 0.5, %v138_v6  ;;  %vm3245_vm14 = vcmp.lt.f32.partialorder %v151_v12, 1.0 }
  0xa2   :  { %v258_v18 = vpop.permute.xlu1 %257  ;;  %896 = vperm.xlu0 %2619, %v2854_v27   ;;  %v254_v22 = vpop.permute.xlu0 %253  ;;  %4211 = vst [vmem:[#allocation23_spill] sm:$0xff] %v4210_v63  ;;  %4212 = vst [vmem:[#allocation24_spill] sm:$0xff] %v3231_v33  ;;  %v4214_v7 = vmov 0  ;;  %v153_v58 = vand.u32 2147483647, %v137_v26  ;;  %v185_v37 = vmul.f32 0.5, %v137_v26 }
  0xa3   :  { %4213 = vst [vmem:[#allocation25_spill] sm:$0xff] %v3234_v40  ;;  %v321_v19 = vsub.f32 %v258_v18, %v3212_v11  ;;  %v4215_v7 = vsel %vm3245_vm14, 4294967295, %v4214_v7  ;;  %v320_v2 = vsub.f32 %v254_v22, %v3212_v11  ;;  %vm3265_vm15 = vcmp.lt.f32.partialorder %v154_v8, 1.0  ;;  %v4280_v63 = vld [vmem:[#allocation10_spill] sm:$0xff] }
  0xa4   :  { %4216 = vst [vmem:[#allocation26_spill] sm:$0xff] %v4215_v7  ;;  %v3269_v20 = vmul.f32 %v186_v23, %v138_v6  ;;  %v3271_v54 = vadd.f32 -0.5, %v154_v8  ;;  %v3274_v40 = vmul.f32 %v185_v37, %v137_v26  ;;  %v3284_v8 = vadd.f32 -0.5, %v153_v58 }
  0xa5   :  { %v337_v62 = vand.u32 2147483647, %v321_v19  ;;  %v369_v25 = vmul.f32 0.5, %v321_v19  ;;  %v368_v5 = vmul.f32 0.5, %v320_v2  ;;  %vm3291_vm14 = vcmp.lt.f32.partialorder %v153_v58, 1.0 }
  0xa6   :  { %v262_v27 = vpop.permute.xlu1 %261  ;;  %900 = vperm.xlu0 %2619, %v2871_v31   ;;  %v266_v12 = vpop.permute.xlu0 %265  ;;  %v336_v31 = vand.u32 2147483647, %v320_v2  ;;  %v234_v58 = vsel %vm3265_vm15, %v3269_v20, %v3271_v54 }
  0xa7   :  { %v322_v22 = vsub.f32 %v262_v27, %v3212_v11  ;;  %v323_v14 = vsub.f32 %v266_v12, %v3212_v11  ;;  %v385_v27 = vmul.f32 %v369_v25, %v321_v19  ;;  %v2301_v17 = vadd.f32 -0.5, %v337_v62  ;;  %v4251_v45 = vld [vmem:[#allocation19_spill] sm:$0xff] }
  0xa8   :  { %vm3276_vm0 = vcmp.lt.f32.partialorder %v337_v62, 1.0  ;;  %v384_v7 = vmul.f32 %v368_v5, %v320_v2  ;;  %v2300_v37 = vadd.f32 -0.5, %v336_v31  ;;  %vm3297_vm11 = vcmp.lt.f32.partialorder %v336_v31, 1.0 }
  0xa9   :  { %v338_v4 = vand.u32 2147483647, %v322_v22  ;;  %v370_v13 = vmul.f32 0.5, %v322_v22  ;;  %v339_v12 = vand.u32 2147483647, %v323_v14  ;;  %v371_v9 = vmul.f32 0.5, %v323_v14 }
  0xaa   :  { %v270_v46 = vpop.permute.xlu1 %269  ;;  %904 = vperm.xlu0 %2619, %v2866_v30   ;;  %v274_v18 = vpop.permute.xlu0 %273  ;;  %v4231_v31 = vsel %vm3091_vm4, %v3095_v49, %v3097_v50  ;;  %v416_v48 = vsel %vm3297_vm11, %v384_v7, %v2300_v37 }
  0xab   :  { %vm3280_vm1 = vcmp.lt.f32.partialorder %v338_v4, 1.0  ;;  %v386_v6 = vmul.f32 %v370_v13, %v322_v22  ;;  %v2302_v19 = vadd.f32 -0.5, %v338_v4  ;;  %vm3286_vm13 = vcmp.lt.f32.partialorder %v339_v12, 1.0 }
  0xac   :  { %v387_v30 = vmul.f32 %v371_v9, %v323_v14  ;;  %v2303_v26 = vadd.f32 -0.5, %v339_v12  ;;  %v325_v62 = vsub.f32 %v274_v18, %v3212_v11  ;;  %v417_v13 = vsel %vm3276_vm0, %v385_v27, %v2301_v17 }
  0xad   :  { %v418_v4 = vsel %vm3280_vm1, %v386_v6, %v2302_v19  ;;  %v4229_v14 = vmov 5   ;;  %v4230_v17 = vsel %vm3068_vm2, %v3075_v38, %v3077_v39  ;;  %v3318_v18 = vsub.f32 %v270_v46, %v3212_v11 }
  0xae   :  { %v278_v9 = vpop.permute.xlu1 %277  ;;  %2620 = vset.pattern.permute.xlu0 %v4229_v14  ;;  %v282_v5 = vpop.permute.xlu0 %281  ;;  %v3313_v33 = vadd.f32 %v418_v4, %v4230_v17  ;;  %v419_v2 = vsel %vm3286_vm13, %v387_v30, %v2303_v26  ;;  %v341_v34 = vand.u32 2147483647, %v325_v62  ;;  %v373_v12 = vmul.f32 0.5, %v325_v62 }
  0xaf   :  { %1041 = vperm.xlu0 %2620, %v2726_v1   ;;  %v3326_v27 = vadd.f32 %v419_v2, %v4231_v31  ;;  %v326_v38 = vsub.f32 %v278_v9, %v3212_v11  ;;  %v233_v30 = vsel %vm3291_vm14, %v3274_v40, %v3284_v8  ;;  %v4232_v1 = vsel %vm3105_vm5, %v3099_v51, %v3101_v52 }
  0xb0   :  { %v3338_v39 = vadd.f32 %v417_v13, %v4232_v1  ;;  %v327_v49 = vsub.f32 %v282_v5, %v3212_v11  ;;  %vm357_vm2 = vcmp.lt.f32.partialorder %v341_v34, 1.0  ;;  %v389_v50 = vmul.f32 %v373_v12, %v325_v62 }
  0xb1   :  { %v2305_v46 = vadd.f32 -0.5, %v341_v34  ;;  %v342_v23 = vand.u32 2147483647, %v326_v38  ;;  %v372_v25 = vmul.f32 0.5, %v3318_v18  ;;  %v374_v26 = vmul.f32 0.5, %v326_v38 }
  0xb2   :  { %v286_v6 = vpop.permute.xlu1 %285  ;;  %v290_v19 = vpop.permute.xlu0 %289  ;;  %v343_v55 = vand.u32 2147483647, %v327_v49  ;;  %v375_v4 = vmul.f32 0.5, %v327_v49  ;;  %v4233_v51 = vsel %vm3079_vm3, %v3083_v44, %v3089_v47  ;;  %v4236_v13 = vsel %vm3114_vm6, %v3109_v56, %v3111_v57 }
  0xb3   :  { %1049 = vperm.xlu0 %2620, %v2721_v0   ;;  %v3350_v52 = vadd.f32 %v416_v48, %v4233_v51  ;;  %v421_v7 = vsel %vm357_vm2, %v389_v50, %v2305_v46  ;;  %vm3352_vm4 = vcmp.lt.f32.partialorder %v342_v23, 1.0  ;;  %v2306_v62 = vadd.f32 -0.5, %v342_v23 }
  0xb4   :  { %v3361_v22 = vadd.f32 %v421_v7, %v4236_v13  ;;  %v390_v0 = vmul.f32 %v374_v26, %v326_v38  ;;  %vm3363_vm5 = vcmp.lt.f32.partialorder %v343_v55, 1.0  ;;  %v391_v44 = vmul.f32 %v375_v4, %v327_v49  ;;  %v4262_v26 = vld [vmem:[#allocation8_spill] sm:$0xff] }
  0xb5   :  { %v340_v47 = vand.u32 2147483647, %v3318_v18  ;;  %v2307_v9 = vadd.f32 -0.5, %v343_v55  ;;  %v328_v14 = vsub.f32 %v286_v6, %v3212_v11  ;;  %v329_v5 = vsub.f32 %v290_v19, %v3212_v11 }
  0xb6   :  { %v294_v17 = vpop.permute.xlu1 %293  ;;  %v298_v61 = vpop.permute.xlu0 %297  ;;  %v3371_v2 = vmul.f32 %v372_v25, %v3318_v18  ;;  %v422_v56 = vsel %vm3352_vm4, %v390_v0, %v2306_v62  ;;  %v4239_v34 = vsel %vm3166_vm8, %v3153_v15, %v3158_v35  ;;  %v4240_v48 = vsel %vm3162_vm7, %v3149_v29, %v3151_v32 }
  0xb7   :  { %v330_v57 = vsub.f32 %v294_v17, %v3212_v11  ;;  %v331_v31 = vsub.f32 %v298_v61, %v3212_v11  ;;  %1053 = vperm.xlu0 %2620, %v2733_v3   ;;  %v3383_v12 = vadd.f32 %v422_v56, %v4239_v34  ;;  %v423_v18 = vsel %vm3363_vm5, %v391_v44, %v2307_v9  ;;  %v4254_v56 = vld [vmem:[#allocation7_spill] sm:$0xff] }
  0xb8   :  { %v344_v38 = vand.u32 2147483647, %v328_v14  ;;  %v376_v1 = vmul.f32 0.5, %v328_v14  ;;  %v3392_v49 = vadd.f32 %v423_v18, %v4240_v48  ;;  %v345_v3 = vand.u32 2147483647, %v329_v5  ;;  %v4257_v48 = vld [vmem:[#allocation16_spill] sm:$0xff] }
  0xb9   :  { %v377_v50 = vmul.f32 0.5, %v329_v5  ;;  %v346_v42 = vand.u32 2147483647, %v330_v57  ;;  %v378_v23 = vmul.f32 0.5, %v330_v57  ;;  %vm3403_vm7 = vcmp.lt.f32.partialorder %v340_v47, 1.0 }
  0xba   :  { %vm3394_vm3 = vcmp.lt.f32.partialorder %v344_v38, 1.0  ;;  %v392_v15 = vmul.f32 %v376_v1, %v328_v14  ;;  %v2308_v35 = vadd.f32 -0.5, %v344_v38  ;;  %v302_v6 = vpop.permute.xlu1 %301  ;;  %v306_v19 = vpop.permute.xlu0 %305  ;;  %vm361_vm6 = vcmp.lt.f32.partialorder %v345_v3, 1.0  ;;  %v4252_v14 = vld [vmem:[#allocation20_spill] sm:$0xff] }
  0xbb   :  { %v393_v25 = vmul.f32 %v377_v50, %v329_v5  ;;  %v2309_v41 = vadd.f32 -0.5, %v345_v3  ;;  %vm3398_vm8 = vcmp.lt.f32.partialorder %v346_v42, 1.0  ;;  %1057 = vperm.xlu0 %2620, %v2765_v10   ;;  %v394_v55 = vmul.f32 %v378_v23, %v330_v57  ;;  %v4259_v3 = vld [vmem:[#allocation17_spill] sm:$0xff] }
  0xbc   :  { %v424_v32 = vsel %vm3394_vm3, %v392_v15, %v2308_v35  ;;  %v2310_v4 = vadd.f32 -0.5, %v346_v42  ;;  %v347_v51 = vand.u32 2147483647, %v331_v31  ;;  %v4247_v7 = vsel %vm3188_vm10, %v3192_v24, %v3194_v28 }
  0xbd   :  { %v3414_v37 = vadd.f32 %v424_v32, %v4247_v7  ;;  %v425_v62 = vsel %vm361_vm6, %v393_v25, %v2309_v41  ;;  %v379_v13 = vmul.f32 0.5, %v331_v31  ;;  %v332_v10 = vsub.f32 %v302_v6, %v3212_v11  ;;  %v3462_v25 = vld [vmem:[%s4144_s4 + $0x2] ss:$0 sm:$0xff]  ;;  %v4267_v7 = vld [vmem:[#allocation26_spill] sm:$0xff] }
  0xbe   :  { %v4248_v0 = vsel %vm3170_vm9, %v3174_v53, %v3176_v59  ;;  %v426_v44 = vsel %vm3398_vm8, %v394_v55, %v2310_v4  ;;  %vm3426_vm11 = vcmp.lt.f32.partialorder %v347_v51, 1.0  ;;  %v2311_v24 = vadd.f32 -0.5, %v347_v51  ;;  %v310_v28 = vpop.permute.xlu1 %309  ;;  %1559 = vadd.xlane.f32.xlu1 %v3066_v16  ;;  %v314_v9 = vpop.permute.xlu0 %313  ;;  %v4263_v55 = vld [vmem:[#allocation13_spill] sm:$0xff] }
  0xbf   :  { %v3422_v43 = vadd.f32 %v425_v62, %v4248_v0  ;;  %v4253_v5 = vsel %vm3223_vm12, %v4251_v45, %v4252_v14  ;;  %v395_v59 = vmul.f32 %v379_v13, %v331_v31  ;;  %v348_v17 = vand.u32 2147483647, %v332_v10  ;;  %1061 = vperm.xlu0 %2620, %v4254_v56   ;;  %v4269_v62 = vld [vmem:[#allocation24_spill] sm:$0xff]  ;;  %v4270_v13 = vld [vmem:[#allocation25_spill] sm:$0xff] }
  0xc0   :  { %v3436_v53 = vadd.f32 %v426_v44, %v4253_v5  ;;  %v380_v61 = vmul.f32 0.5, %v332_v10  ;;  %v3439_v57 = vadd.f32 -0.5, %v340_v47  ;;  %v333_v34 = vsub.f32 %v306_v19, %v3212_v11  ;;  %v4260_v47 = vld [vmem:[#allocation18_spill] sm:$0xff]  ;;  %v4276_v56 = vld [vmem:[#allocation21_spill] sm:$0xff] }
  0xc1   :  { %v334_v18 = vsub.f32 %v310_v28, %v3212_v11  ;;  %v335_v16 = vsub.f32 %v314_v9, %v3212_v11  ;;  %v427_v60 = vsel %vm3426_vm11, %v395_v59, %v2311_v24  ;;  %vm3446_vm9 = vcmp.lt.f32.partialorder %v348_v17, 1.0 }
  0xc2   :  { %v396_v31 = vmul.f32 %v380_v61, %v332_v10  ;;  %v2312_v1 = vadd.f32 -0.5, %v348_v17  ;;  %vm4258_vm10 = vnez %v4257_v48  ;;  %v349_v46 = vand.u32 2147483647, %v333_v34  ;;  %v4274_v61 = vld [vmem:[#allocation23_spill] sm:$0xff] }
  0xc3   :  { %v4261_v50 = vsel %vm4258_vm10, %v4259_v3, %v4260_v47  ;;  %v381_v15 = vmul.f32 0.5, %v333_v34  ;;  %v350_v35 = vand.u32 2147483647, %v334_v18  ;;  %v382_v23 = vmul.f32 0.5, %v334_v18  ;;  %v451_v41 = vpop.permute.xlu1 %450  ;;  %1069 = vperm.xlu0 %2620, %v4262_v26   ;;  %v455_v32 = vpop.permute.xlu0 %454 }
  0xc4   :  { %v3455_v42 = vadd.f32 %v427_v60, %v4261_v50  ;;  %v428_v11 = vsel %vm3446_vm9, %v396_v31, %v2312_v1  ;;  %v351_v6 = vand.u32 2147483647, %v335_v16  ;;  %v383_v19 = vmul.f32 0.5, %v335_v16 }
  0xc5   :  { %v4264_v4 = vand.u32 2147483647, %v4263_v55  ;;  %vm4268_vm13 = vnez %v4267_v7  ;;  %vm365_vm0 = vcmp.lt.f32.partialorder %v349_v46, 1.0  ;;  %v397_v44 = vmul.f32 %v381_v15, %v333_v34  ;;  %v4277_v34 = vld [vmem:[#allocation22_spill] sm:$0xff] }
  0xc6   :  { %v4271_v10 = vsel %vm4268_vm13, %v4269_v62, %v4270_v13  ;;  %v2313_v21 = vadd.f32 -0.5, %v349_v46  ;;  %vm366_vm1 = vcmp.lt.f32.partialorder %v350_v35, 1.0  ;;  %v398_v24 = vmul.f32 %v382_v23, %v334_v18 }
  0xc7   :  { %vm3467_vm12 = vcmp.lt.f32.partialorder %v4264_v4, 1.0  ;;  %v3476_v0 = vadd.f32 %v428_v11, %v4271_v10  ;;  %v2314_v28 = vadd.f32 -0.5, %v350_v35  ;;  %vm3478_vm2 = vcmp.lt.f32.partialorder %v351_v6, 1.0  ;;  %v459_v1 = vpop.permute.xlu1 %458  ;;  %v467_v48 = vpop.permute.xlu0 %466  ;;  %v4285_v10 = vld [vmem:[#allocation15_spill] sm:$0xff] }
  0xc8   :  { %v429_v45 = vsel %vm365_vm0, %v397_v44, %v2313_v21  ;;  %v399_v14 = vmul.f32 %v383_v19, %v335_v16  ;;  %v2315_v5 = vadd.f32 -0.5, %v351_v6  ;;  %v517_v59 = vsub.f32 %v451_v41, %v3462_v25  ;;  %v4279_v16 = vld [vmem:[#allocation9_spill] sm:$0xff]  ;;  %v4286_v44 = vld [vmem:[#allocation14_spill] sm:$0xff] }
  0xc9   :  { %v420_v17 = vsel %vm3403_vm7, %v3371_v2, %v3439_v57  ;;  %vm4275_vm4 = vnez %v4274_v61  ;;  %v430_v38 = vsel %vm366_vm1, %v398_v24, %v2314_v28  ;;  %v518_v31 = vsub.f32 %v455_v32, %v3462_v25  ;;  %1077 = vperm.xlu0 %2620, %v4279_v16  }
  0xca   :  { %v4278_v18 = vsel %vm4275_vm4, %v4276_v56, %v4277_v34  ;;  %v3501_v2 = vadd.f32 %v430_v38, %v233_v30  ;;  %v431_v29 = vsel %vm3478_vm2, %v399_v14, %v2315_v5  ;;  %v533_v57 = vand.u32 2147483647, %v517_v59 }
  0xcb   :  { %v3492_v60 = vadd.f32 %v429_v45, %v4278_v18  ;;  %v565_v3 = vmul.f32 0.5, %v517_v59  ;;  %v3510_v47 = vadd.f32 %v431_v29, %v234_v58  ;;  %v534_v50 = vand.u32 2147483647, %v518_v31  ;;  %v463_v23 = vpop.permute.xlu1 %462  ;;  %v475_v6 = vpop.permute.xlu0 %474  ;;  %v4287_v45 = vld [vmem:[#allocation11_spill] sm:$0xff] }
  0xcc   :  { %v566_v46 = vmul.f32 0.5, %v518_v31  ;;  %v519_v36 = vsub.f32 %v459_v1, %v3462_v25  ;;  %vm549_vm5 = vcmp.lt.f32.partialorder %v533_v57, 1.0  ;;  %v2317_v8 = vadd.f32 -0.5, %v533_v57 }
  0xcd   :  { %v581_v40 = vmul.f32 %v565_v3, %v517_v59  ;;  %v521_v30 = vsub.f32 %v467_v48, %v3462_v25  ;;  %vm550_vm14 = vcmp.lt.f32.partialorder %v534_v50, 1.0  ;;  %v2318_v35 = vadd.f32 -0.5, %v534_v50  ;;  %1085 = vperm.xlu0 %2620, %v4280_v63  }
  0xce   :  { %v582_v15 = vmul.f32 %v566_v46, %v518_v31  ;;  %v535_v11 = vand.u32 2147483647, %v519_v36  ;;  %v567_v20 = vmul.f32 0.5, %v519_v36  ;;  %v520_v24 = vsub.f32 %v463_v23, %v3462_v25  ;;  %v4290_v46 = vld [vmem:[#allocation12_spill] sm:$0xff] }
  0xcf   :  { %v613_v54 = vsel %vm549_vm5, %v581_v40, %v2317_v8  ;;  %v537_v58 = vand.u32 2147483647, %v521_v30  ;;  %v569_v19 = vmul.f32 0.5, %v521_v30  ;;  %v523_v28 = vsub.f32 %v475_v6, %v3462_v25  ;;  %v471_v9 = vpop.permute.xlu1 %470  ;;  %v483_v14 = vpop.permute.xlu0 %482 }
  0xd0   :  { %v3516_v41 = vadd.f32 %v613_v54, %v3350_v52  ;;  %v614_v26 = vsel %vm550_vm14, %v582_v15, %v2318_v35  ;;  %vm3518_vm15 = vcmp.lt.f32.partialorder %v535_v11, 1.0  ;;  %v2319_v55 = vadd.f32 -0.5, %v535_v11 }
  0xd1   :  { %v3523_v4 = vadd.f32 %v614_v26, %v3338_v39  ;;  %v583_v7 = vmul.f32 %v567_v20, %v519_v36  ;;  %vm3525_vm3 = vcmp.lt.f32.partialorder %v537_v58, 1.0  ;;  %v585_v13 = vmul.f32 %v569_v19, %v521_v30  ;;  %v2626_v39 = vld [vmem:[%s4143_s3 + $0x8] sm:$0xff]  ;;  %1093 = vperm.xlu0 %2620, %v4287_v45  }
  0xd2   :  { %v223_v52 = vsel %vm3467_vm12, %v4286_v44, %v4285_v10  ;;  %v2321_v21 = vadd.f32 -0.5, %v537_v58  ;;  %1045 = vperm.xlu1 %2621, %v2626_v39   ;;  %v522_v51 = vsub.f32 %v471_v9, %v3462_v25  ;;  %v525_v61 = vsub.f32 %v483_v14, %v3462_v25 }
  0xd3   :  { %v436_v5 = vadd.f32 %v420_v17, %v223_v52  ;;  %v615_v59 = vsel %vm3518_vm15, %v583_v7, %v2319_v55  ;;  %v536_v18 = vand.u32 2147483647, %v520_v24  ;;  %v568_v38 = vmul.f32 0.5, %v520_v24  ;;  %v479_v50 = vpop.permute.xlu1 %478  ;;  %v491_v36 = vpop.permute.xlu0 %490 }
  0xd4   :  { %v3544_v56 = vadd.f32 %v615_v59, %v3313_v33  ;;  %v617_v34 = vsel %vm3525_vm3, %v585_v13, %v2321_v21  ;;  %v539_v1 = vand.u32 2147483647, %v523_v28  ;;  %v571_v16 = vmul.f32 0.5, %v523_v28  ;;  %v2627_v33 = vld [vmem:[%s4143_s3 + $0x30] sm:$0xff] }
  0xd5   :  { %v3548_v31 = vadd.f32 %v617_v34, %v436_v5  ;;  %v538_v17 = vand.u32 2147483647, %v522_v51  ;;  %vm3550_vm6 = vcmp.lt.f32.partialorder %v536_v18, 1.0  ;;  %v584_v29 = vmul.f32 %v568_v38, %v520_v24  ;;  %1101 = vperm.xlu0 %2620, %v4290_v46   ;;  %v2629_v5 = vld [vmem:[%s4143_s3 + $0x50] sm:$0xff] }
  0xd6   :  { %v2320_v57 = vadd.f32 -0.5, %v536_v18  ;;  %v570_v3 = vmul.f32 0.5, %v522_v51  ;;  %1065 = vperm.xlu1 %2621, %v2627_v33   ;;  %vm555_vm8 = vcmp.lt.f32.partialorder %v539_v1, 1.0  ;;  %v587_v40 = vmul.f32 %v571_v16, %v523_v28 }
  0xd7   :  { %v2323_v8 = vadd.f32 -0.5, %v539_v1  ;;  %vm3558_vm7 = vcmp.lt.f32.partialorder %v538_v17, 1.0  ;;  %v2322_v11 = vadd.f32 -0.5, %v538_v17  ;;  %v541_v23 = vand.u32 2147483647, %v525_v61  ;;  %v487_v55 = vpop.permute.xlu1 %486  ;;  %v499_v7 = vpop.permute.xlu0 %498 }
  0xd8   :  { %v616_v15 = vsel %vm3550_vm6, %v584_v29, %v2320_v57  ;;  %v586_v35 = vmul.f32 %v570_v3, %v522_v51  ;;  %v573_v54 = vmul.f32 0.5, %v525_v61  ;;  %v524_v20 = vsub.f32 %v479_v50, %v3462_v25 }
  0xd9   :  { %v3565_v63 = vadd.f32 %v616_v15, %v3326_v27  ;;  %v619_v6 = vsel %vm555_vm8, %v587_v40, %v2323_v8  ;;  %vm3573_vm11 = vcmp.lt.f32.partialorder %v541_v23, 1.0  ;;  %v2325_v32 = vadd.f32 -0.5, %v541_v23  ;;  %v2628_v27 = vld [vmem:[%s4143_s3 + $0x40] sm:$0xff] }
  0xda   :  { %v3569_v58 = vadd.f32 %v619_v6, %v3383_v12  ;;  %v618_v19 = vsel %vm3558_vm7, %v586_v35, %v2322_v11  ;;  %1073 = vperm.xlu1 %2621, %v2628_v27   ;;  %v589_v12 = vmul.f32 %v573_v54, %v525_v61  ;;  %v540_v13 = vand.u32 2147483647, %v524_v20 }
  0xdb   :  { %v3581_v62 = vadd.f32 %v618_v19, %v3361_v22  ;;  %v572_v10 = vmul.f32 0.5, %v524_v20  ;;  %v527_v44 = vsub.f32 %v491_v36, %v3462_v25  ;;  %v526_v52 = vsub.f32 %v487_v55, %v3462_v25  ;;  %v495_v59 = vpop.permute.xlu1 %494  ;;  %v507_v51 = vpop.permute.xlu0 %506 }
  0xdc   :  { %v529_v21 = vsub.f32 %v499_v7, %v3462_v25  ;;  %v621_v24 = vsel %vm3573_vm11, %v589_v12, %v2325_v32  ;;  %vm556_vm9 = vcmp.lt.f32.partialorder %v540_v13, 1.0  ;;  %v2324_v39 = vadd.f32 -0.5, %v540_v13  ;;  %v2631_v12 = vld [vmem:[%s4143_s3 + $0x70] sm:$0xff] }
  0xdd   :  { %v588_v28 = vmul.f32 %v572_v10, %v524_v20  ;;  %v3589_v9 = vadd.f32 %v621_v24, %v3414_v37  ;;  %v543_v22 = vand.u32 2147483647, %v527_v44  ;;  %v575_v45 = vmul.f32 0.5, %v527_v44 }
  0xde   :  { %v542_v14 = vand.u32 2147483647, %v526_v52  ;;  %1081 = vperm.xlu1 %2621, %v2629_v5   ;;  %v574_v34 = vmul.f32 0.5, %v526_v52  ;;  %v545_v18 = vand.u32 2147483647, %v529_v21  ;;  %v577_v38 = vmul.f32 0.5, %v529_v21 }
  0xdf   :  { %v620_v61 = vsel %vm556_vm9, %v588_v28, %v2324_v39  ;;  %vm559_vm10 = vcmp.lt.f32.partialorder %v543_v22, 1.0  ;;  %v591_v37 = vmul.f32 %v575_v45, %v527_v44  ;;  %v2327_v16 = vadd.f32 -0.5, %v543_v22  ;;  %v503_v36 = vpop.permute.xlu1 %502 }
  0xe0   :  { %v3595_v1 = vadd.f32 %v620_v61, %v3392_v49  ;;  %vm3597_vm12 = vcmp.lt.f32.partialorder %v542_v14, 1.0  ;;  %v590_v48 = vmul.f32 %v574_v34, %v526_v52  ;;  %v2326_v29 = vadd.f32 -0.5, %v542_v14  ;;  %v2630_v49 = vld [vmem:[%s4143_s3 + $0x60] sm:$0xff]  ;;  %v648_v35 = vpop.permute.xlu0 %647 }
  0xe1   :  { %vm3601_vm13 = vcmp.lt.f32.partialorder %v545_v18, 1.0  ;;  %v623_v3 = vsel %vm559_vm10, %v591_v37, %v2327_v16  ;;  %v593_v33 = vmul.f32 %v577_v38, %v529_v21  ;;  %v2329_v50 = vadd.f32 -0.5, %v545_v18 }
  0xe2   :  { %v528_v46 = vsub.f32 %v495_v59, %v3462_v25  ;;  %1089 = vperm.xlu1 %2621, %v2630_v49   ;;  %v3610_v40 = vadd.f32 %v623_v3, %v3436_v53  ;;  %v622_v8 = vsel %vm3597_vm12, %v590_v48, %v2326_v29  ;;  %v531_v30 = vsub.f32 %v507_v51, %v3462_v25  ;;  %v3624_v53 = vld [vmem:[%s4144_s4 + $0x3] ss:$0 sm:$0xff] }
  0xe3   :  { %v530_v15 = vsub.f32 %v503_v36, %v3462_v25  ;;  %v3617_v11 = vadd.f32 %v622_v8, %v3422_v43  ;;  %v625_v23 = vsel %vm3601_vm13, %v593_v33, %v2329_v50  ;;  %v511_v13 = vpop.permute.xlu1 %510  ;;  %v714_v28 = vsub.f32 %v648_v35, %v3624_v53 }
  0xe4   :  { %v544_v6 = vand.u32 2147483647, %v528_v46  ;;  %v576_v54 = vmul.f32 0.5, %v528_v46  ;;  %v3627_v20 = vadd.f32 %v625_v23, %v3476_v0  ;;  %v547_v19 = vand.u32 2147483647, %v531_v30  ;;  %v660_v44 = vpop.permute.xlu0 %659 }
  0xe5   :  { %v579_v26 = vmul.f32 0.5, %v531_v30  ;;  %v546_v32 = vand.u32 2147483647, %v530_v15  ;;  %v578_v7 = vmul.f32 0.5, %v530_v15  ;;  %v532_v45 = vsub.f32 %v511_v13, %v3462_v25 }
  0xe6   :  { %vm3629_vm0 = vcmp.lt.f32.partialorder %v544_v6, 1.0  ;;  %v592_v43 = vmul.f32 %v576_v54, %v528_v46  ;;  %v2328_v55 = vadd.f32 -0.5, %v544_v6  ;;  %1097 = vperm.xlu1 %2621, %v2631_v12   ;;  %vm563_vm1 = vcmp.lt.f32.partialorder %v547_v19, 1.0 }
  0xe7   :  { %v595_v10 = vmul.f32 %v579_v26, %v531_v30  ;;  %v2331_v0 = vadd.f32 -0.5, %v547_v19  ;;  %vm562_vm2 = vcmp.lt.f32.partialorder %v546_v32, 1.0  ;;  %v594_v21 = vmul.f32 %v578_v7, %v530_v15 }
  0xe8   :  { %v624_v52 = vsel %vm3629_vm0, %v592_v43, %v2328_v55  ;;  %v2330_v24 = vadd.f32 -0.5, %v546_v32  ;;  %v717_v14 = vsub.f32 %v660_v44, %v3624_v53  ;;  %v730_v51 = vand.u32 2147483647, %v714_v28  ;;  %v652_v16 = vpop.permute.xlu1 %651 }
  0xe9   :  { %v3640_v39 = vadd.f32 %v624_v52, %v3455_v42  ;;  %v627_v22 = vsel %vm563_vm1, %v595_v10, %v2331_v0  ;;  %v762_v61 = vmul.f32 0.5, %v714_v28  ;;  %v548_v18 = vand.u32 2147483647, %v532_v45  ;;  %v668_v42 = vpop.permute.xlu0 %667 }
  0xea   :  { %v3645_v5 = vadd.f32 %v627_v22, %v3501_v2  ;;  %v626_v59 = vsel %vm562_vm2, %v594_v21, %v2330_v24  ;;  %v580_v38 = vmul.f32 0.5, %v532_v45  ;;  %v733_v37 = vand.u32 2147483647, %v717_v14 }
  0xeb   :  { %v3648_v34 = vadd.f32 %v626_v59, %v3492_v60  ;;  %vm746_vm4 = vcmp.lt.f32.partialorder %v730_v51, 1.0  ;;  %v778_v17 = vmul.f32 %v762_v61, %v714_v28  ;;  %v2334_v48 = vadd.f32 -0.5, %v730_v51 }
  0xec   :  { %v765_v25 = vmul.f32 0.5, %v717_v14  ;;  %vm564_vm5 = vcmp.lt.f32.partialorder %v548_v18, 1.0  ;;  %v596_v29 = vmul.f32 %v580_v38, %v532_v45  ;;  %v2332_v57 = vadd.f32 -0.5, %v548_v18  ;;  %v3655_v36 = vpop.permute.xlu1 %655 }
  0xed   :  { %vm749_vm14 = vcmp.lt.f32.partialorder %v733_v37, 1.0  ;;  %v810_v2 = vsel %vm746_vm4, %v778_v17, %v2334_v48  ;;  %v2337_v33 = vadd.f32 -0.5, %v733_v37  ;;  %v715_v50 = vsub.f32 %v652_v16, %v3624_v53  ;;  %v676_v8 = vpop.permute.xlu0 %675 }
  0xee   :  { %v781_v3 = vmul.f32 %v765_v25, %v717_v14  ;;  %v3652_v60 = vadd.f32 %v810_v2, %v3516_v41  ;;  %v628_v46 = vsel %vm564_vm5, %v596_v29, %v2332_v57  ;;  %v719_v49 = vsub.f32 %v668_v42, %v3624_v53 }
  0xef   :  { %v3658_v30 = vadd.f32 %v628_v46, %v3510_v47  ;;  %v731_v35 = vand.u32 2147483647, %v715_v50  ;;  %v763_v23 = vmul.f32 0.5, %v715_v50  ;;  %v1854_v26 = vlaneseq }
  0xf0   :  { %v813_v15 = vsel %vm749_vm14, %v781_v3, %v2337_v33  ;;  %v735_v54 = vand.u32 2147483647, %v719_v49  ;;  %v767_v19 = vmul.f32 0.5, %v719_v49  ;;  %v721_v27 = vsub.f32 %v676_v8, %v3624_v53  ;;  %v3664_v7 = vpop.permute.xlu1 %663 }
  0xf1   :  { %v3661_v6 = vadd.f32 %v813_v15, %v3565_v63  ;;  %vm747_vm15 = vcmp.lt.f32.partialorder %v731_v35, 1.0  ;;  %v779_v41 = vmul.f32 %v763_v23, %v715_v50  ;;  %v2335_v32 = vadd.f32 -0.5, %v731_v35  ;;  %v684_v47 = vpop.permute.xlu0 %683 }
  0xf2   :  { %vm751_vm3 = vcmp.lt.f32.partialorder %v735_v54, 1.0  ;;  %v783_v43 = vmul.f32 %v767_v19, %v719_v49  ;;  %v2339_v55 = vadd.f32 -0.5, %v735_v54  ;;  %v737_v13 = vand.u32 2147483647, %v721_v27 }
  0xf3   :  { %v811_v12 = vsel %vm747_vm15, %v779_v41, %v2335_v32  ;;  %v769_v10 = vmul.f32 0.5, %v721_v27  ;;  %v3670_v44 = vshrl.u32 %v1854_v26, 7  ;;  %v723_v28 = vsub.f32 %v684_v47, %v3624_v53 }
  0xf4   :  { %v3667_v63 = vadd.f32 %v811_v12, %v3523_v4  ;;  %v815_v0 = vsel %vm751_vm3, %v783_v43, %v2339_v55  ;;  %vm753_vm6 = vcmp.lt.f32.partialorder %v737_v13, 1.0  ;;  %v2341_v24 = vadd.f32 -0.5, %v737_v13  ;;  %v672_v14 = vpop.permute.xlu1 %671 }
  0xf5   :  { %v3673_v52 = vadd.f32 %v815_v0, %v3581_v62  ;;  %v785_v21 = vmul.f32 %v769_v10, %v721_v27  ;;  %v692_v22 = vpop.permute.xlu0 %691  ;;  %v3677_v45 = vadd.s32 8, %v3670_v44  ;;  %v3680_v4 = vadd.s32 16, %v3670_v44  ;;  %v3701_v27 = vld [vmem:[%s4144_s4 + $0x4] ss:$0 sm:$0xff] }
  0xf6   :  { %v725_v51 = vsub.f32 %v692_v22, %v3624_v53  ;;  %v739_v62 = vand.u32 2147483647, %v723_v28  ;;  %v771_v18 = vmul.f32 0.5, %v723_v28  ;;  %v3692_v50 = vadd.s32 24, %v3670_v44 }
  0xf7   :  { %v817_v59 = vsel %vm753_vm6, %v785_v21, %v2341_v24  ;;  %v720_v19 = vsub.f32 %v672_v14, %v3624_v53 }
  0xf8   :  { %v3684_v61 = vadd.f32 %v817_v59, %v3595_v1  ;;  %vm755_vm8 = vcmp.lt.f32.partialorder %v739_v62, 1.0  ;;  %v787_v37 = vmul.f32 %v771_v18, %v723_v28  ;;  %v2343_v16 = vadd.f32 -0.5, %v739_v62  ;;  %v680_v25 = vpop.permute.xlu1 %679 }
  0xf9   :  { %v700_v38 = vpop.permute.xlu0 %699  ;;  %v741_v42 = vand.u32 2147483647, %v725_v51  ;;  %v773_v48 = vmul.f32 0.5, %v725_v51  ;;  %v736_v10 = vand.u32 2147483647, %v720_v19  ;;  %v768_v0 = vmul.f32 0.5, %v720_v19 }
  0xfa   :  { %v819_v17 = vsel %vm755_vm8, %v787_v37, %v2343_v16  ;;  %v727_v1 = vsub.f32 %v700_v38, %v3624_v53  ;;  %v722_v24 = vsub.f32 %v680_v25, %v3624_v53 }
  0xfb   :  { %v3687_v29 = vadd.f32 %v819_v17, %v3617_v11  ;;  %vm757_vm7 = vcmp.lt.f32.partialorder %v741_v42, 1.0  ;;  %v2345_v57 = vadd.f32 -0.5, %v741_v42  ;;  %v789_v3 = vmul.f32 %v773_v48, %v725_v51 }
  0xfc   :  { %v743_v8 = vand.u32 2147483647, %v727_v1  ;;  %v775_v15 = vmul.f32 0.5, %v727_v1  ;;  %v688_v35 = vpop.permute.xlu1 %687  ;;  %vm3715_vm12 = vcmp.lt.f32.partialorder %v736_v10, 1.0  ;;  %v784_v38 = vmul.f32 %v768_v0, %v720_v19 }
  0xfd   :  { %v708_v2 = vpop.permute.xlu0 %707  ;;  %v821_v46 = vsel %vm757_vm7, %v789_v3, %v2345_v57  ;;  %v2340_v37 = vadd.f32 -0.5, %v736_v10  ;;  %v738_v16 = vand.u32 2147483647, %v722_v24  ;;  %v770_v42 = vmul.f32 0.5, %v722_v24 }
  0xfe   :  { %v729_v33 = vsub.f32 %v708_v2, %v3624_v53  ;;  %v3695_v49 = vadd.f32 %v821_v46, %v3640_v39  ;;  %vm759_vm11 = vcmp.lt.f32.partialorder %v743_v8, 1.0  ;;  %v791_v41 = vmul.f32 %v775_v15, %v727_v1 }
  0xff   :  { %v2347_v32 = vadd.f32 -0.5, %v743_v8  ;;  %v816_v3 = vsel %vm3715_vm12, %v784_v38, %v2340_v37  ;;  %v2342_v46 = vadd.f32 -0.5, %v738_v16  ;;  %vm3727_vm0 = vcmp.lt.f32.partialorder %v738_v16, 1.0 }
 0x100   :  { %v745_v11 = vand.u32 2147483647, %v729_v33  ;;  %v777_v23 = vmul.f32 0.5, %v729_v33  ;;  %v3713_v22 = vpop.permute.xlu1 %695  ;;  %v724_v15 = vsub.f32 %v688_v35, %v3624_v53  ;;  %v716_v37 = vsub.f32 %v3655_v36, %v3624_v53 }
 0x101   :  { %v849_v54 = vpop.permute.xlu0 %848  ;;  %v823_v43 = vsel %vm759_vm11, %v791_v41, %v2347_v32  ;;  %v718_v16 = vsub.f32 %v3664_v7, %v3624_v53  ;;  %v726_v36 = vsub.f32 %v3713_v22, %v3624_v53 }
 0x102   :  { %vm761_vm9 = vcmp.lt.f32.partialorder %v745_v11, 1.0  ;;  %v793_v39 = vmul.f32 %v777_v23, %v729_v33  ;;  %v2349_v55 = vadd.f32 -0.5, %v745_v11  ;;  %v3704_v47 = vadd.f32 %v823_v43, %v3648_v34 }
 0x103   :  { %v912_v12 = vsub.f32 %v849_v54, %v3701_v27  ;;  %v786_v33 = vmul.f32 %v770_v42, %v722_v24  ;;  %v832_v23 = vadd.f32 %v816_v3, %v3569_v58  ;;  %v740_v10 = vand.u32 2147483647, %v724_v15 }
 0x104   :  { %v825_v21 = vsel %vm761_vm9, %v793_v39, %v2349_v55  ;;  %v3723_v25 = vpop.permute.xlu1 %703  ;;  %v772_v0 = vmul.f32 0.5, %v724_v15  ;;  %v732_v3 = vand.u32 2147483647, %v716_v37  ;;  %v734_v8 = vand.u32 2147483647, %v718_v16 }
 0x105   :  { %v3707_v13 = vpop.permute.xlu0 %860  ;;  %v3711_v28 = vadd.f32 %v825_v21, %v3658_v30  ;;  %v928_v14 = vand.u32 2147483647, %v912_v12  ;;  %v960_v59 = vmul.f32 0.5, %v912_v12  ;;  %v818_v32 = vsel %vm3727_vm0, %v786_v33, %v2342_v46 }
 0x106   :  { %v834_v58 = vadd.f32 %v818_v32, %v3589_v9  ;;  %vm756_vm2 = vcmp.lt.f32.partialorder %v740_v10, 1.0  ;;  %vm3765_vm5 = vcmp.lt.f32.partialorder %v732_v3, 1.0  ;;  %vm3769_vm14 = vcmp.lt.f32.partialorder %v734_v8, 1.0 }
 0x107   :  { %vm944_vm10 = vcmp.lt.f32.partialorder %v928_v14, 1.0  ;;  %v976_v51 = vmul.f32 %v960_v59, %v912_v12  ;;  %v2352_v34 = vadd.f32 -0.5, %v928_v14  ;;  %v788_v59 = vmul.f32 %v772_v0, %v724_v15 }
 0x108   :  { %v766_v15 = vmul.f32 0.5, %v718_v16  ;;  %v2336_v0 = vadd.f32 -0.5, %v732_v3 }
 0x109   :  { %v869_v62 = vpop.permute.xlu0 %868  ;;  %v1008_v17 = vsel %vm944_vm10, %v976_v51, %v2352_v34  ;;  %v845_v43 = vpop.permute.xlu1 %844  ;;  %v2344_v51 = vadd.f32 -0.5, %v740_v10 }
 0x10a   :  { %v917_v30 = vsub.f32 %v869_v62, %v3701_v27  ;;  %v3721_v48 = vadd.f32 %v1008_v17, %v3667_v63 }
 0x10b   :  { %v820_v42 = vsel %vm756_vm2, %v788_v59, %v2344_v51 }
 0x10c   :  { %v933_v57 = vand.u32 2147483647, %v917_v30  ;;  %v965_v1 = vmul.f32 0.5, %v917_v30  ;;  %v836_v33 = vadd.f32 %v820_v42, %v3610_v40 }
 0x10d   :  { %v877_v2 = vpop.permute.xlu0 %876  ;;  %v853_v62 = vpop.permute.xlu1 %852 }
 0x10e   :  { %vm949_vm13 = vcmp.lt.f32.partialorder %v933_v57, 1.0  ;;  %v981_v11 = vmul.f32 %v965_v1, %v917_v30  ;;  %v2357_v63 = vadd.f32 -0.5, %v933_v57  ;;  %v919_v54 = vsub.f32 %v877_v2, %v3701_v27 }
 0x10f   :  { %v764_v1 = vmul.f32 0.5, %v716_v37  ;;  %v913_v40 = vsub.f32 %v853_v62, %v3701_v27 }
 0x110   :  { %v1013_v41 = vsel %vm949_vm13, %v981_v11, %v2357_v63  ;;  %v935_v55 = vand.u32 2147483647, %v919_v54  ;;  %v967_v12 = vmul.f32 0.5, %v919_v54 }
 0x111   :  { %v3734_v19 = vpop.permute.xlu0 %880  ;;  %v3738_v39 = vadd.f32 %v1013_v41, %v832_v23  ;;  %v857_v46 = vpop.permute.xlu1 %856  ;;  %v915_v23 = vsub.f32 %v3707_v13, %v3701_v27  ;;  %v780_v22 = vmul.f32 %v764_v1, %v716_v37  ;;  %v742_v13 = vand.u32 2147483647, %v726_v36 }
 0x112   :  { %vm951_vm1 = vcmp.lt.f32.partialorder %v935_v55, 1.0  ;;  %v983_v35 = vmul.f32 %v967_v12, %v919_v54  ;;  %v2359_v21 = vadd.f32 -0.5, %v935_v55  ;;  %v911_v54 = vsub.f32 %v845_v43, %v3701_v27 }
 0x113   :  { %v931_v59 = vand.u32 2147483647, %v915_v23  ;;  %v963_v51 = vmul.f32 0.5, %v915_v23  ;;  %v961_v37 = vmul.f32 0.5, %v913_v40  ;;  %vm3783_vm15 = vcmp.lt.f32.partialorder %v742_v13, 1.0 }
 0x114   :  { %v1015_v14 = vsel %vm951_vm1, %v983_v35, %v2359_v21  ;;  %v782_v35 = vmul.f32 %v766_v15, %v718_v16  ;;  %v2338_v21 = vadd.f32 -0.5, %v734_v8  ;;  %v959_v62 = vmul.f32 0.5, %v911_v54 }
 0x115   :  { %v885_v24 = vpop.permute.xlu0 %884  ;;  %v3741_v34 = vadd.f32 %v1015_v14, %v834_v58  ;;  %v812_v16 = vsel %vm3765_vm5, %v780_v22, %v2336_v0  ;;  %v865_v3 = vpop.permute.xlu1 %864  ;;  %v2346_v15 = vadd.f32 -0.5, %v742_v13  ;;  %vm3787_vm3 = vcmp.lt.f32.partialorder %v931_v59, 1.0 }
 0x116   :  { %v921_v18 = vsub.f32 %v885_v24, %v3701_v27  ;;  %v774_v24 = vmul.f32 0.5, %v726_v36  ;;  %v814_v1 = vsel %vm3769_vm14, %v782_v35, %v2338_v21  ;;  %v2355_v10 = vadd.f32 -0.5, %v931_v59 }
 0x117   :  { %v977_v35 = vmul.f32 %v961_v37, %v913_v40 }
 0x118   :  { %v937_v17 = vand.u32 2147483647, %v921_v18  ;;  %v969_v9 = vmul.f32 0.5, %v921_v18  ;;  %v790_v8 = vmul.f32 %v774_v24, %v726_v36 }
 0x119   :  { %v3744_v38 = vpop.permute.xlu0 %888 }
 0x11a   :  { %vm953_vm4 = vcmp.lt.f32.partialorder %v937_v17, 1.0  ;;  %v985_v57 = vmul.f32 %v969_v9, %v921_v18  ;;  %v2361_v2 = vadd.f32 -0.5, %v937_v17  ;;  %v2500_v7 = vpop.f32.mrb[0].mxu0  ;;  %v2512_v63 = vpop.f32.mrb[0].mxu1  ;;  %v927_v17 = vand.u32 2147483647, %v911_v54 }
 0x11b   :  { %v3762_v55 = vpop.f32.mrb[1].mxu0  ;;  %v1503_v12 = vpop.f32.mrb[1].mxu1  ;;  %v929_v9 = vand.u32 2147483647, %v913_v40  ;;  %v920_v40 = vsub.f32 %v3734_v19, %v3701_v27 }
 0x11c   :  { %v1017_v11 = vsel %vm953_vm4, %v985_v57, %v2361_v2  ;;  %v3779_v2 = vsub.f32 %v3723_v25, %v3624_v53  ;;  %v979_v12 = vmul.f32 %v963_v51, %v915_v23  ;;  %v975_v53 = vmul.f32 %v959_v62, %v911_v54 }
 0x11d   :  { %v3750_v30 = vpop.permute.xlu0 %892  ;;  %v3758_v41 = vadd.f32 %v1017_v11, %v836_v33  ;;  %v2351_v0 = vadd.f32 -0.5, %v927_v17  ;;  %v2353_v21 = vadd.f32 -0.5, %v929_v9  ;;  %vm3796_vm6 = vcmp.lt.f32.partialorder %v927_v17, 1.0 }
 0x11e   :  { %v2503_v43 = vpop.f32.mrb[2].mxu0  ;;  %v2515_v58 = vpop.f32.mrb[2].mxu1  ;;  %v744_v36 = vand.u32 2147483647, %v3779_v2  ;;  %v776_v13 = vmul.f32 0.5, %v3779_v2  ;;  %vm3800_vm8 = vcmp.lt.f32.partialorder %v929_v9, 1.0  ;;  %v822_v54 = vsel %vm3783_vm15, %v790_v8, %v2346_v15 }
 0x11f   :  { %v1473_v42 = vpop.f32.mrb[3].mxu0  ;;  %v1513_v57 = vpop.f32.mrb[3].mxu1  ;;  %v914_v43 = vsub.f32 %v857_v46, %v3701_v27  ;;  %v3811_v46 = vld [vmem:[%s4144_s4 + $0x5] ss:$0 sm:$0xff]  ;;  %v828_v51 = vadd.f32 %v812_v16, %v3544_v56  ;;  %v830_v62 = vadd.f32 %v814_v1, %v3548_v31  ;;  %v1007_v37 = vsel %vm3796_vm6, %v975_v53, %v2351_v0 }
 0x120   :  { %v1011_v42 = vsel %vm3787_vm3, %v979_v12, %v2355_v10  ;;  %v1009_v19 = vsel %vm3800_vm8, %v977_v35, %v2353_v21  ;;  %v3822_v15 = vadd.f32 %v822_v54, %v3627_v20  ;;  %v3825_v56 = vmul.f32 %v776_v13, %v3779_v2  ;;  %v873_v16 = vpop.permute.xlu1 %872 }
 0x121   :  { %v3760_v32 = vpop.permute.xlu0 %896  ;;  %v930_v57 = vand.u32 2147483647, %v914_v43  ;;  %v962_v33 = vmul.f32 0.5, %v914_v43  ;;  %v3829_v31 = vadd.f32 -0.5, %v744_v36  ;;  %v968_v63 = vmul.f32 0.5, %v920_v40 }
 0x122   :  { %v2506_v11 = vpop.f32.mrb[4].mxu0  ;;  %v2518_v7 = vpop.f32.mrb[4].mxu1  ;;  %v916_v12 = vsub.f32 %v865_v3, %v3701_v27  ;;  %v1023_v10 = vadd.f32 %v1007_v37, %v3652_v60  ;;  %v1025_v20 = vadd.f32 %v1009_v19, %v828_v51  ;;  %v922_v37 = vsub.f32 %v3744_v38, %v3701_v27 }
 0x123   :  { %v1483_v22 = vpop.f32.mrb[5].mxu0  ;;  %v1523_v58 = vpop.f32.mrb[5].mxu1  ;;  %v3832_v11 = vadd.f32 %v1011_v42, %v830_v62  ;;  %v936_v7 = vand.u32 2147483647, %v920_v40  ;;  %vm3836_vm7 = vcmp.lt.f32.partialorder %v930_v57, 1.0  ;;  %v978_v35 = vmul.f32 %v962_v33, %v914_v43 }
 0x124   :  { %v2354_v21 = vadd.f32 -0.5, %v930_v57  ;;  %v918_v58 = vsub.f32 %v873_v16, %v3701_v27  ;;  %v984_v60 = vmul.f32 %v968_v63, %v920_v40  ;;  %v938_v3 = vand.u32 2147483647, %v922_v37 }
 0x125   :  { %v3773_v18 = vpop.permute.xlu0 %900  ;;  %vm3842_vm9 = vcmp.lt.f32.partialorder %v936_v7, 1.0  ;;  %v2360_v51 = vadd.f32 -0.5, %v936_v7  ;;  %v3875_v33 = vand.u32 127, %v1854_v26 }
 0x126   :  { %v2509_v14 = vpop.f32.mrb[6].mxu0  ;;  %v2521_v59 = vpop.f32.mrb[6].mxu1  ;;  %v966_v63 = vmul.f32 0.5, %v918_v58  ;;  %vm3887_vm2 = vcmp.lt.f32.partialorder %v938_v3, 1.0 }
 0x127   :  { %v1493_v17 = vpop.f32.mrb[7].mxu0  ;;  %v1533_v9 = vpop.f32.mrb[7].mxu1  ;;  %v932_v14 = vand.u32 2147483647, %v916_v12  ;;  %v964_v59 = vmul.f32 0.5, %v916_v12 }
 0x128   :  { %v1010_v17 = vsel %vm3836_vm7, %v978_v35, %v2354_v21  ;;  %v934_v9 = vand.u32 2147483647, %v918_v58  ;;  %v1016_v21 = vsel %vm3842_vm9, %v984_v60, %v2360_v51  ;;  %vm1875_vm9 = vcmp.ne.s32.totalorder %v3670_v44, %v3875_v33 }
 0x129   :  { %v3791_v25 = vpop.permute.xlu0 %904  ;;  %v2356_v7 = vadd.f32 -0.5, %v932_v14  ;;  %vm3855_vm12 = vcmp.lt.f32.partialorder %v932_v14, 1.0  ;;  %v1026_v35 = vadd.f32 %v1010_v17, %v3661_v6  ;;  %v3872_v17 = vadd.f32 %v1016_v21, %v3687_v29 }
 0x12a   :  { %vm3864_vm13 = vcmp.lt.f32.partialorder %v934_v9, 1.0  ;;  %v2358_v6 = vadd.f32 -0.5, %v934_v9 }
 0x12e   :  { %v1042_v8 = vpop.permute.xlu0 %1041 }
 0x12f   :  { %v1108_v1 = vsub.f32 %v1042_v8, %v3811_v46 }
 0x131   :  { %v1124_v53 = vand.u32 2147483647, %v1108_v1  ;;  %v1156_v22 = vmul.f32 0.5, %v1108_v1 }
 0x132   :  { %v1050_v13 = vpop.permute.xlu0 %1049 }
 0x133   :  { %vm1140_vm11 = vcmp.lt.f32.partialorder %v1124_v53, 1.0  ;;  %v1172_v24 = vmul.f32 %v1156_v22, %v1108_v1  ;;  %v2368_v23 = vadd.f32 -0.5, %v1124_v53  ;;  %v1110_v54 = vsub.f32 %v1050_v13, %v3811_v46 }
 0x134   :  { %v980_v1 = vmul.f32 %v964_v59, %v916_v12 }
 0x135   :  { %v1204_v62 = vsel %vm1140_vm11, %v1172_v24, %v2368_v23  ;;  %v1126_v42 = vand.u32 2147483647, %v1110_v54  ;;  %v1158_v43 = vmul.f32 0.5, %v1110_v54 }
 0x136   :  { %v1220_v19 = vadd.f32 %v1204_v62, %v1023_v10  ;;  %v1054_v57 = vpop.permute.xlu0 %1053  ;;  %v1012_v59 = vsel %vm3855_vm12, %v980_v1, %v2356_v7  ;;  %v982_v62 = vmul.f32 %v966_v63, %v918_v58  ;;  %v923_v1 = vsub.f32 %v3750_v30, %v3701_v27 }
 0x137   :  { %vm3850_vm10 = vcmp.lt.f32.partialorder %v1126_v42, 1.0  ;;  %v1174_v40 = vmul.f32 %v1158_v43, %v1110_v54  ;;  %v2370_v8 = vadd.f32 -0.5, %v1126_v42  ;;  %v1111_v16 = vsub.f32 %v1054_v57, %v3811_v46 }
 0x138   :  { %v1236_v53 = vmul.f32 0.33333334, %v1220_v19  ;;  %v1014_v29 = vsel %vm3864_vm13, %v982_v62, %v2358_v6 }
 0x139   :  { %v1206_v38 = vsel %vm3850_vm10, %v1174_v40, %v2370_v8  ;;  %v1127_v10 = vand.u32 2147483647, %v1111_v16  ;;  %v1159_v0 = vmul.f32 0.5, %v1111_v16  ;;  %vm1923_vm10 = vcmp.lt.s32.totalorder %v3875_v33, 8 }
 0x13a   :  { %1252 = vst [vmem:[#allocation2] sm:$0xff] %v1236_v53  ;;  %v1222_v12 = vadd.f32 %v1206_v38, %v1025_v20  ;;  %v1058_v24 = vpop.permute.xlu0 %1057  ;;  %v970_v20 = vmul.f32 0.5, %v922_v37 }
 0x13b   :  { %vm1143_vm0 = vcmp.lt.f32.partialorder %v1127_v10, 1.0  ;;  %v1175_v23 = vmul.f32 %v1159_v0, %v1111_v16  ;;  %v2371_v54 = vadd.f32 -0.5, %v1127_v10  ;;  %v1112_v14 = vsub.f32 %v1058_v24, %v3811_v46 }
 0x13c   :  { %v1238_v42 = vmul.f32 0.33333334, %v1222_v12  ;;  %v1028_v16 = vadd.f32 %v1012_v59, %v3673_v52  ;;  %v986_v38 = vmul.f32 %v970_v20, %v922_v37  ;;  %v2362_v10 = vadd.f32 -0.5, %v938_v3 }
 0x13d   :  { %v1207_v60 = vsel %vm1143_vm0, %v1175_v23, %v2371_v54  ;;  %v1128_v51 = vand.u32 2147483647, %v1112_v14  ;;  %v1160_v43 = vmul.f32 0.5, %v1112_v14  ;;  %v924_v52 = vsub.f32 %v3760_v32, %v3701_v27 }
 0x13e   :  { %1254 = vst [vmem:[#allocation2 + $0x10] sm:$0xff] %v1238_v42  ;;  %v1223_v19 = vadd.f32 %v1207_v60, %v1026_v35  ;;  %v1062_v57 = vpop.permute.xlu0 %1061  ;;  %v1030_v24 = vadd.f32 %v1014_v29, %v3684_v61  ;;  %v939_v23 = vand.u32 2147483647, %v923_v1  ;;  %v971_v37 = vmul.f32 0.5, %v923_v1  ;;  %v2416_v29 = vld [vmem:[%s4142_s2] ss:$0 sm:$0xff] }
 0x13f   :  { %vm3877_vm1 = vcmp.lt.f32.partialorder %v1128_v51, 1.0  ;;  %v1176_v58 = vmul.f32 %v1160_v43, %v1112_v14  ;;  %v2372_v9 = vadd.f32 -0.5, %v1128_v51  ;;  %v1113_v8 = vsub.f32 %v1062_v57, %v3811_v46  ;;  %s4052_s2 = smov 0  }
 0x140   :  { %v1239_v7 = vmul.f32 0.33333334, %v1223_v19  ;;  %v1018_v62 = vsel %vm3887_vm2, %v986_v38, %v2362_v10  ;;  %v940_v6 = vand.u32 2147483647, %v924_v52  ;;  %v972_v42 = vmul.f32 0.5, %v924_v52 }
 0x141   :  { %v1208_v63 = vsel %vm3877_vm1, %v1176_v58, %v2372_v9  ;;  %v1129_v53 = vand.u32 2147483647, %v1113_v8  ;;  %v1161_v22 = vmul.f32 0.5, %v1113_v8  ;;  %vm3912_vm14 = vcmp.lt.f32.partialorder %v939_v23, 1.0 }
 0x142   :  { %1255 = vst [vmem:[#allocation2 + $0x18] sm:$0xff] %v1239_v7  ;;  %v1224_v0 = vadd.f32 %v1208_v63, %v3832_v11  ;;  %v1070_v35 = vpop.permute.xlu0 %1069  ;;  %v1629_v11 = vmul.f32 2.0, %v3762_v55  ;;  %v3916_v55 = vmul.f32 %v971_v37, %v923_v1  ;;  %v926_v57 = vsub.f32 %v3791_v25, %v3701_v27 }
 0x143   :  { %vm3896_vm4 = vcmp.lt.f32.partialorder %v1129_v53, 1.0  ;;  %v1177_v21 = vmul.f32 %v1161_v22, %v1113_v8  ;;  %v2373_v13 = vadd.f32 -0.5, %v1129_v53  ;;  %v1115_v12 = vsub.f32 %v1070_v35, %v3811_v46 }
 0x144   :  { %v1240_v54 = vmul.f32 0.33333334, %v1224_v0  ;;  %v3920_v58 = vadd.f32 -0.5, %v939_v23  ;;  %vm3927_vm15 = vcmp.lt.f32.partialorder %v940_v6, 1.0  ;;  %v988_v1 = vmul.f32 %v972_v42, %v924_v52 }
 0x145   :  { %v1209_v32 = vsel %vm3896_vm4, %v1177_v21, %v2373_v13  ;;  %v1131_v14 = vand.u32 2147483647, %v1115_v12  ;;  %v1163_v59 = vmul.f32 0.5, %v1115_v12  ;;  %v2364_v26 = vadd.f32 -0.5, %v940_v6 }
 0x146   :  { %1256 = vst [vmem:[#allocation2 + $0x20] sm:$0xff] %v1240_v54  ;;  %v1225_v3 = vadd.f32 %v1209_v32, %v1028_v16  ;;  %v1034_v35 = vadd.f32 %v1018_v62, %v3695_v49  ;;  %v974_v30 = vmul.f32 0.5, %v926_v57  ;;  %v3943_v54 = vsub.f32 %v3773_v18, %v3701_v27 }
 0x147   :  { %vm3907_vm5 = vcmp.lt.f32.partialorder %v1131_v14, 1.0  ;;  %v1179_v51 = vmul.f32 %v1163_v59, %v1115_v12  ;;  %v2375_v43 = vadd.f32 -0.5, %v1131_v14  ;;  %v942_v12 = vand.u32 2147483647, %v926_v57 }
 0x148   :  { %v1078_v60 = vpop.permute.xlu0 %1077  ;;  %v1241_v40 = vmul.f32 0.33333334, %v1225_v3  ;;  %v1020_v37 = vsel %vm3927_vm15, %v988_v1, %v2364_v26  ;;  %v941_v53 = vand.u32 2147483647, %v3943_v54  ;;  %vm3983_vm0 = vcmp.lt.f32.partialorder %v744_v36, 1.0  ;;  %vm4020_vm15 = vmand %vm1875_vm9, %vm1923_vm10 }
 0x149   :  { %v1117_v20 = vsub.f32 %v1078_v60, %v3811_v46  ;;  %v1211_v9 = vsel %vm3907_vm5, %v1179_v51, %v2375_v43  ;;  %v990_v60 = vmul.f32 %v974_v30, %v926_v57  ;;  %v2366_v18 = vadd.f32 -0.5, %v942_v12 }
 0x14a   :  { %1257 = vst [vmem:[#allocation2 + $0x28] sm:$0xff] %v1241_v40  ;;  %v1227_v25 = vadd.f32 %v1211_v9, %v1030_v24  ;;  %vm3960_vm8 = vcmp.lt.f32.partialorder %v942_v12, 1.0 }
 0x14b   :  { %v1133_v8 = vand.u32 2147483647, %v1117_v20  ;;  %v1165_v16 = vmul.f32 0.5, %v1117_v20  ;;  %v1560_v0 = vpop.xlane.xlu1 %1559 }
 0x14c   :  { %v1086_v63 = vpop.permute.xlu0 %1085  ;;  %v1243_v21 = vmul.f32 0.33333334, %v1227_v25  ;;  %v1613_v13 = vadd.f32 %v2416_v29, %v1560_v0 }
 0x14d   :  { %vm3931_vm3 = vcmp.lt.f32.partialorder %v1133_v8, 1.0  ;;  %v1181_v22 = vmul.f32 %v1165_v16, %v1117_v20  ;;  %v2377_v38 = vadd.f32 -0.5, %v1133_v8  ;;  %v1119_v10 = vsub.f32 %v1086_v63, %v3811_v46 }
 0x14e   :  { %1259 = vst [vmem:[#allocation2 + $0x38] sm:$0xff] %v1243_v21  ;;  %v1645_v49 = vsub.f32 %v1613_v13, %v1629_v11  ;;  %v1019_v20 = vsel %vm3912_vm14, %v3916_v55, %v3920_v58  ;;  %v1036_v8 = vadd.f32 %v1020_v37, %v3704_v47  ;;  %vm4026_vm14 = vcmp.lt.f32.partialorder %v941_v53, 1.0 }
 0x14f   :  { %v1213_v52 = vsel %vm3931_vm3, %v1181_v22, %v2377_v38  ;;  %v1135_v24 = vand.u32 2147483647, %v1119_v10  ;;  %v1167_v23 = vmul.f32 0.5, %v1119_v10  ;;  %v1022_v22 = vsel %vm3960_vm8, %v990_v60, %v2366_v18 }
 0x150   :  { %v1229_v32 = vadd.f32 %v1213_v52, %v3872_v17  ;;  %v1094_v14 = vpop.permute.xlu0 %1093  ;;  %v3951_v51 = vmax.f32 %v1645_v49, 0.0  ;;  %v973_v60 = vmul.f32 0.5, %v3943_v54 }
 0x151   :  { %vm3946_vm6 = vcmp.lt.f32.partialorder %v1135_v24, 1.0  ;;  %v1183_v62 = vmul.f32 %v1167_v23, %v1119_v10  ;;  %v2379_v6 = vadd.f32 -0.5, %v1135_v24  ;;  %v1121_v42 = vsub.f32 %v1094_v14, %v3811_v46  ;;  %v1046_v3 = vpop.permute.xlu1 %1045 }
 0x152   :  { %v1245_v61 = vmul.f32 0.33333334, %v1229_v32  ;;  %v1109_v27 = vsub.f32 %v1046_v3, %v3811_v46  ;;  %2622 = vrsqrt.f32 %v3951_v51  ;;  %v1038_v24 = vadd.f32 %v1022_v22, %v3711_v28 }
 0x153   :  { %v1215_v17 = vsel %vm3946_vm6, %v1183_v62, %v2379_v6  ;;  %v1137_v11 = vand.u32 2147483647, %v1121_v42  ;;  %v1169_v43 = vmul.f32 0.5, %v1121_v42  ;;  %vm1679_vm2 = vcmp.eq.f32.partialorder %v3951_v51, inf }
 0x154   :  { %1261 = vst [vmem:[#allocation2 + $0x48] sm:$0xff] %v1245_v61  ;;  %v1231_v57 = vadd.f32 %v1215_v17, %v1034_v35  ;;  %v1102_v9 = vpop.permute.xlu0 %1101  ;;  %v1125_v26 = vand.u32 2147483647, %v1109_v27  ;;  %v1157_v25 = vmul.f32 0.5, %v1109_v27  ;;  %vm1681_vm4 = vcmp.eq.f32.partialorder %v3951_v51, 0.0 }
 0x155   :  { %vm1153_vm7 = vcmp.lt.f32.partialorder %v1137_v11, 1.0  ;;  %v1185_v16 = vmul.f32 %v1169_v43, %v1121_v42  ;;  %v2381_v29 = vadd.f32 -0.5, %v1137_v11  ;;  %v1066_v7 = vpop.permute.xlu1 %1065  ;;  %v1123_v63 = vsub.f32 %v1102_v9, %v3811_v46 }
 0x156   :  { %v1247_v1 = vmul.f32 0.33333334, %v1231_v57  ;;  %v1114_v10 = vsub.f32 %v1066_v7, %v3811_v46  ;;  %vm1141_vm11 = vcmp.lt.f32.partialorder %v1125_v26, 1.0  ;;  %v1173_v47 = vmul.f32 %v1157_v25, %v1109_v27 }
 0x157   :  { %v1217_v38 = vsel %vm1153_vm7, %v1185_v16, %v2381_v29  ;;  %v2369_v35 = vadd.f32 -0.5, %v1125_v26  ;;  %v1139_v30 = vand.u32 2147483647, %v1123_v63  ;;  %v1171_v21 = vmul.f32 0.5, %v1123_v63 }
 0x158   :  { %1263 = vst [vmem:[#allocation2 + $0x58] sm:$0xff] %v1247_v1  ;;  %v1233_v0 = vadd.f32 %v1217_v38, %v1036_v8  ;;  %v1130_v13 = vand.u32 2147483647, %v1114_v10  ;;  %v1162_v12 = vmul.f32 0.5, %v1114_v10  ;;  %v1682_v16 = vand.u32 2147483648, %v3951_v51 }
 0x159   :  { %v1074_v52 = vpop.permute.xlu1 %1073  ;;  %v1205_v37 = vsel %vm1141_vm11, %v1173_v47, %v2369_v35  ;;  %vm1155_vm12 = vcmp.lt.f32.partialorder %v1139_v30, 1.0  ;;  %v1187_v14 = vmul.f32 %v1171_v21, %v1123_v63  ;;  %v2383_v59 = vadd.f32 -0.5, %v1139_v30 }
 0x15a   :  { %v1249_v23 = vmul.f32 0.33333334, %v1233_v0  ;;  %v1116_v32 = vsub.f32 %v1074_v52, %v3811_v46  ;;  %v1221_v49 = vadd.f32 %v1205_v37, %v3721_v48  ;;  %vm3977_vm13 = vcmp.lt.f32.partialorder %v1130_v13, 1.0 }
 0x15b   :  { %v1178_v6 = vmul.f32 %v1162_v12, %v1114_v10  ;;  %v2374_v42 = vadd.f32 -0.5, %v1130_v13  ;;  %v1219_v61 = vsel %vm1155_vm12, %v1187_v14, %v2383_v59  ;;  %v2365_v21 = vadd.f32 -0.5, %v941_v53 }
 0x15c   :  { %1265 = vst [vmem:[#allocation2 + $0x68] sm:$0xff] %v1249_v23  ;;  %v1132_v3 = vand.u32 2147483647, %v1116_v32  ;;  %v1237_v48 = vmul.f32 0.33333334, %v1221_v49  ;;  %v1164_v27 = vmul.f32 0.5, %v1116_v32  ;;  %v2623_v17 = vpop.eup %2622  ;;  %v1235_v11 = vadd.f32 %v1219_v61, %v1038_v24 }
 0x15d   :  { %v1082_v18 = vpop.permute.xlu1 %1081  ;;  %v1210_v43 = vsel %vm3977_vm13, %v1178_v6, %v2374_v42  ;;  %v1678_v36 = vmul.f32 %v2623_v17, %v3951_v51 }
 0x15e   :  { %vm3990_vm1 = vcmp.lt.f32.partialorder %v1132_v3, 1.0  ;;  %v2376_v2 = vadd.f32 -0.5, %v1132_v3  ;;  %1253 = vst [vmem:[#allocation2 + $0x8] sm:$0xff] %v1237_v48  ;;  %v1226_v57 = vadd.f32 %v1210_v43, %v3738_v39  ;;  %v1180_v9 = vmul.f32 %v1164_v27, %v1116_v32 }
 0x15f   :  { %v1118_v8 = vsub.f32 %v1082_v18, %v3811_v46  ;;  %v1251_v29 = vmul.f32 0.33333334, %v1235_v11  ;;  %v1680_v7 = vsel %vm1679_vm2, %v3951_v51, %v1678_v36  ;;  %v1035_v51 = vadd.f32 %v1019_v20, %v3822_v15 }
 0x160   :  { %v1242_v1 = vmul.f32 0.33333334, %v1226_v57  ;;  %v1212_v26 = vsel %vm3990_vm1, %v1180_v9, %v2376_v2  ;;  %v1683_v22 = vsel %vm1681_vm4, %v1682_v16, %v1680_v7  ;;  %v989_v20 = vmul.f32 %v973_v60, %v3943_v54 }
 0x161   :  { %v1134_v25 = vand.u32 2147483647, %v1118_v8  ;;  %v1090_v63 = vpop.permute.xlu1 %1089  ;;  %1267 = vst [vmem:[#allocation2 + $0x78] sm:$0xff] %v1251_v29  ;;  %v1228_v39 = vadd.f32 %v1212_v26, %v3741_v34  ;;  %v1166_v38 = vmul.f32 0.5, %v1118_v8  ;;  %v1789_v0 = vsub.f32 0.0, %v1683_v22 }
 0x162   :  { %v1120_v10 = vsub.f32 %v1090_v63, %v3811_v46  ;;  %1258 = vst [vmem:[#allocation2 + $0x30] sm:$0xff] %v1242_v1  ;;  %v824_v54 = vsel %vm3983_vm0, %v3825_v56, %v3829_v31  ;;  %v1021_v3 = vsel %vm4026_vm14, %v989_v20, %v2365_v21  ;;  %v4050_v36 = vmov 0.0  }
 0x163   :  { %vm4011_vm5 = vcmp.lt.f32.partialorder %v1134_v25, 1.0  ;;  %v2378_v35 = vadd.f32 -0.5, %v1134_v25  ;;  %v1244_v19 = vmul.f32 0.33333334, %v1228_v39  ;;  %v1182_v30 = vmul.f32 %v1166_v38, %v1118_v8 }
 0x164   :  { %v1136_v55 = vand.u32 2147483647, %v1120_v10  ;;  %v1168_v15 = vmul.f32 0.5, %v1120_v10  ;;  %v1806_v13 = vmul.f32 0.5, %v1789_v0 }
 0x165   :  { %v1098_v12 = vpop.permute.xlu1 %1097  ;;  %1260 = vst [vmem:[#allocation2 + $0x40] sm:$0xff] %v1244_v19  ;;  %v1214_v52 = vsel %vm4011_vm5, %v1182_v30, %v2378_v35 }
 0x166   :  { %vm1152_vm3 = vcmp.lt.f32.partialorder %v1136_v55, 1.0  ;;  %v1184_v24 = vmul.f32 %v1168_v15, %v1120_v10  ;;  %v2380_v23 = vadd.f32 -0.5, %v1136_v55  ;;  %v1822_v37 = vmul.f32 1.442695, %v1806_v13 }
 0x167   :  { %v1972_v32 = vsel %vm4020_vm15, %v1806_v13, 0.0  ;;  %v1230_v49 = vadd.f32 %v1214_v52, %v3758_v41  ;;  %v1122_v14 = vsub.f32 %v1098_v12, %v3811_v46  ;;  %v840_v41 = vadd.f32 %v824_v54, %v3645_v5 }
 0x168   :  { %v2003_v53 = vrot.slane %v1972_v32, 4  ;;  %v1216_v59 = vsel %vm1152_vm3, %v1184_v24, %v2380_v23  ;;  %2624 = vpow2.f32 %v1822_v37 }
 0x169   :  { %v1246_v62 = vmul.f32 0.33333334, %v1230_v49  ;;  %v1232_v6 = vadd.f32 %v1216_v59, %v1035_v51  ;;  %v1138_v42 = vand.u32 2147483647, %v1122_v14  ;;  %v1170_v48 = vmul.f32 0.5, %v1122_v14 }
 0x16a   :  { %v2004_v60 = vadd.f32 %v2003_v53, %v1972_v32  ;;  %v1037_v56 = vadd.f32 %v1021_v3, %v840_v41 }
 0x16b   :  { %1262 = vst [vmem:[#allocation2 + $0x50] sm:$0xff] %v1246_v62  ;;  %v1248_v46 = vmul.f32 0.33333334, %v1232_v6  ;;  %vm1154_vm6 = vcmp.lt.f32.partialorder %v1138_v42, 1.0  ;;  %v2382_v61 = vadd.f32 -0.5, %v1138_v42  ;;  %v1186_v28 = vmul.f32 %v1170_v48, %v1122_v14 }
 0x16c   :  { %v2005_v27 = vrot.slane %v2004_v60, 2 }
 0x16d   :  { %1264 = vst [vmem:[#allocation2 + $0x60] sm:$0xff] %v1248_v46  ;;  %v1218_v18 = vsel %vm1154_vm6, %v1186_v28, %v2382_v61 }
 0x16e   :  { %v2006_v31 = vadd.f32 %v2005_v27, %v2004_v60  ;;  %v1234_v17 = vadd.f32 %v1218_v18, %v1037_v56 }
 0x170   :  { %v2007_v11 = vrot.slane %v2006_v31, 1  ;;  %v1250_v43 = vmul.f32 0.33333334, %v1234_v17 }
 0x172   :  { %v4046_v40 = vadd.f32 %v2007_v11, %v2006_v31  ;;  %v2625_v2 = vpop.eup %2624  ;;  %1266 = vst [vmem:[#allocation2 + $0x70] sm:$0xff] %v1250_v43 }
 0x173   :  { %v1940_v5 = vsel %vm4020_vm15, %v2625_v2, 0.0 }
 0x174   :  { %1956 = vst [vmem:[#allocation3] sm:$0xff] %v1940_v5 }
 0x175 LB: > { %s2417_s10 = sshll.u32 %s2678_s2, 5  ;;  %v2418_v57 = vld [vmem:[#allocation2] ss:$0 sm:$0xff]  ;;  %v2420_v9 = vld [vmem:[#allocation2 + $0x1] ss:$0 sm:$0xff]  ;;  %s2014_s2 = sadd.s32 1, %s2678_s2   ;;  %s2678_s2 = sphi %s4052_s2, %s2014_s2   ;;  %v2674_v36 = vphi %v4050_v36, %v4357_v36  }
 0x176   : > { %s2017_s1 = scalar_lea.vmem [#allocation2], %s2417_s10  ;;  %v2422_v38 = vld [vmem:[#allocation2 + $0x2] ss:$0 sm:$0xff]  ;;  %v2424_v15 = vld [vmem:[#allocation2 + $0x3] ss:$0 sm:$0xff]  ;;  %p2011_p0 = scmp.ge.s32.totalorder %s2014_s2, 4  }
 0x177   : > { %v2426_v32 = vld [vmem:[#allocation2 + $0x4] ss:$0 sm:$0xff]  ;;  %v2428_v60 = vld [vmem:[#allocation2 + $0x5] ss:$0 sm:$0xff]  ;;  %v2430_v17 = vld [vmem:[#allocation2 + $0x6] ss:$0 sm:$0xff] }
 0x178   :  { %s2687_s11 = smov (%p2011_p0), [#allocation4]  }
 0x179   : > { %v4063_v16 = vld [vmem:[%s2017_s1] sm:$0xff]  ;;  %v4065_v29 = vld [vmem:[%s2017_s1 + $0x8] sm:$0xff]  ;;  %v4067_v7 = vld [vmem:[%s2017_s1 + $0x10] sm:$0xff]  ;;  %s2264_s0 = sshll.u32 (%p2011_p0), %s2687_s11, 4  ;;  %s2265_s0 = int_to_ptr.vmem [resolvable:$true] %s2264_s0 }
 0x17a   : > { %v4069_v1 = vld [vmem:[%s2017_s1 + $0x18] sm:$0xff]  ;;  %vm2028_vm8 = vcmp.le.f32.partialorder %v4063_v16, %v2418_v57  ;;  %vm2029_vm7 = vcmp.le.f32.partialorder %v4065_v29, %v2418_v57  ;;  %vm2030_vm11 = vcmp.le.f32.partialorder %v4067_v7, %v2418_v57  ;;  %vm2050_vm9 = vcmp.le.f32.partialorder %v4063_v16, %v2420_v9  ;;  %s2640_s12 = scalar_lea.vmem (%p2011_p0), %s2265_s0, 16  ;;  %s2644_s13 = scalar_lea.vmem (%p2011_p0), %s2265_s0, 32 }
 0x17b   : > { %v2419_v8 = vld [vmem:[#allocation3] ss:$0 sm:$0xff]  ;;  %v2421_v26 = vld [vmem:[#allocation3 + $0x1] ss:$0 sm:$0xff]  ;;  %vm2031_vm12 = vcmp.le.f32.partialorder %v4069_v1, %v2418_v57  ;;  %vm2051_vm13 = vcmp.le.f32.partialorder %v4065_v29, %v2420_v9  ;;  %vm2052_vm0 = vcmp.le.f32.partialorder %v4067_v7, %v2420_v9  ;;  %vm2053_vm1 = vcmp.le.f32.partialorder %v4069_v1, %v2420_v9  ;;  %v2423_v35 = vld [vmem:[#allocation3 + $0x2] ss:$0 sm:$0xff]  ;;  %p2641_p1 = scmp.ne.s32.totalorder (%p2011_p0), %s2265_s0, %s2640_s12  ;;  %p2645_p2 = scmp.lt.s32.totalorder (%p2011_p0), %s2265_s0, %s2265_s0 }
 0x17c   : > { %v2036_v25 = vsel %vm2028_vm8, %v2419_v8, 0.0  ;;  %v2037_v63 = vsel %vm2029_vm7, %v2419_v8, 0.0  ;;  %v2038_v22 = vsel %vm2030_vm11, %v2419_v8, 0.0  ;;  %v2039_v39 = vsel %vm2031_vm12, %v2419_v8, 0.0  ;;  %v2425_v12 = vld [vmem:[#allocation3 + $0x3] ss:$0 sm:$0xff]  ;;  %p2646_p3 = scmp.lt.s32.totalorder (%p2011_p0), %s2644_s13, %s2640_s12 }
 0x17d   : > { %v2058_v10 = vsel %vm2050_vm9, %v2421_v26, 0.0  ;;  %v2059_v51 = vsel %vm2051_vm13, %v2421_v26, 0.0  ;;  %v2060_v0 = vsel %vm2052_vm0, %v2421_v26, 0.0  ;;  %v2061_v47 = vsel %vm2053_vm1, %v2421_v26, 0.0  ;;  %v2427_v59 = vld [vmem:[#allocation3 + $0x4] ss:$0 sm:$0xff] }
 0x17e   : > { %v2062_v34 = vadd.f32 %v2058_v10, %v2036_v25  ;;  %v2063_v19 = vadd.f32 %v2059_v51, %v2037_v63  ;;  %v2064_v30 = vadd.f32 %v2060_v0, %v2038_v22  ;;  %v2065_v55 = vadd.f32 %v2061_v47, %v2039_v39  ;;  %v2429_v27 = vld [vmem:[#allocation3 + $0x5] ss:$0 sm:$0xff]  ;;  %v2431_v57 = vld [vmem:[#allocation3 + $0x6] ss:$0 sm:$0xff]  ;;  %v2432_v63 = vld [vmem:[#allocation2 + $0x7] ss:$0 sm:$0xff]  ;;  %p2647_p4 = por (%p2011_p0), %p2646_p3, %p2645_p2 }
 0x17f   : > { %vm2072_vm2 = vcmp.le.f32.partialorder %v4063_v16, %v2422_v38  ;;  %vm2073_vm4 = vcmp.le.f32.partialorder %v4065_v29, %v2422_v38  ;;  %vm2074_vm5 = vcmp.le.f32.partialorder %v4067_v7, %v2422_v38  ;;  %vm2075_vm15 = vcmp.le.f32.partialorder %v4069_v1, %v2422_v38  ;;  %v2433_v51 = vld [vmem:[#allocation3 + $0x7] ss:$0 sm:$0xff] }
 0x180   : > { %v2080_v58 = vsel %vm2072_vm2, %v2423_v35, 0.0  ;;  %v2081_v20 = vsel %vm2073_vm4, %v2423_v35, 0.0  ;;  %v2082_v21 = vsel %vm2074_vm5, %v2423_v35, 0.0  ;;  %v2083_v13 = vsel %vm2075_vm15, %v2423_v35, 0.0  ;;  %p2648_p5 = pnand (%p2011_p0), %p2647_p4, %p2641_p1 }
 0x181   : > { %v2084_v52 = vadd.f32 %v2080_v58, %v2062_v34  ;;  %v2085_v24 = vadd.f32 %v2081_v20, %v2063_v19  ;;  %v2086_v23 = vadd.f32 %v2082_v21, %v2064_v30  ;;  %v2087_v37 = vadd.f32 %v2083_v13, %v2065_v55 }
 0x182   : > { %vm2094_vm14 = vcmp.le.f32.partialorder %v4063_v16, %v2424_v15  ;;  %vm2095_vm3 = vcmp.le.f32.partialorder %v4065_v29, %v2424_v15  ;;  %vm2096_vm6 = vcmp.le.f32.partialorder %v4067_v7, %v2424_v15  ;;  %vm2097_vm8 = vcmp.le.f32.partialorder %v4069_v1, %v2424_v15 }
 0x183   : > { %v2102_v49 = vsel %vm2094_vm14, %v2425_v12, 0.0  ;;  %v2103_v14 = vsel %vm2095_vm3, %v2425_v12, 0.0  ;;  %v2104_v54 = vsel %vm2096_vm6, %v2425_v12, 0.0  ;;  %v2105_v53 = vsel %vm2097_vm8, %v2425_v12, 0.0 }
 0x184   : > { %v2106_v62 = vadd.f32 %v2102_v49, %v2084_v52  ;;  %v2107_v6 = vadd.f32 %v2103_v14, %v2085_v24  ;;  %v2108_v42 = vadd.f32 %v2104_v54, %v2086_v23  ;;  %v2109_v3 = vadd.f32 %v2105_v53, %v2087_v37 }
 0x185   : > { %vm2116_vm7 = vcmp.le.f32.partialorder %v4063_v16, %v2426_v32  ;;  %vm2117_vm11 = vcmp.le.f32.partialorder %v4065_v29, %v2426_v32  ;;  %vm2118_vm9 = vcmp.le.f32.partialorder %v4067_v7, %v2426_v32  ;;  %vm2119_vm12 = vcmp.le.f32.partialorder %v4069_v1, %v2426_v32 }
 0x186   : > { %v2124_v48 = vsel %vm2116_vm7, %v2427_v59, 0.0  ;;  %v2125_v41 = vsel %vm2117_vm11, %v2427_v59, 0.0  ;;  %v2126_v46 = vsel %vm2118_vm9, %v2427_v59, 0.0  ;;  %v2127_v61 = vsel %vm2119_vm12, %v2427_v59, 0.0 }
 0x187   : > { %v2128_v28 = vadd.f32 %v2124_v48, %v2106_v62  ;;  %v2129_v56 = vadd.f32 %v2125_v41, %v2107_v6  ;;  %v2130_v31 = vadd.f32 %v2126_v46, %v2108_v42  ;;  %v2131_v18 = vadd.f32 %v2127_v61, %v2109_v3 }
 0x188   : > { %vm2138_vm13 = vcmp.le.f32.partialorder %v4063_v16, %v2428_v60  ;;  %vm2139_vm0 = vcmp.le.f32.partialorder %v4065_v29, %v2428_v60  ;;  %vm2140_vm1 = vcmp.le.f32.partialorder %v4067_v7, %v2428_v60  ;;  %vm2141_vm2 = vcmp.le.f32.partialorder %v4069_v1, %v2428_v60 }
 0x189   : > { %v2146_v11 = vsel %vm2138_vm13, %v2429_v27, 0.0  ;;  %v2147_v43 = vsel %vm2139_vm0, %v2429_v27, 0.0  ;;  %v2148_v2 = vsel %vm2140_vm1, %v2429_v27, 0.0  ;;  %v2149_v5 = vsel %vm2141_vm2, %v2429_v27, 0.0 }
 0x18a   : > { %v2150_v9 = vadd.f32 %v2146_v11, %v2128_v28  ;;  %v2151_v8 = vadd.f32 %v2147_v43, %v2129_v56  ;;  %v2152_v26 = vadd.f32 %v2148_v2, %v2130_v31  ;;  %v2153_v25 = vadd.f32 %v2149_v5, %v2131_v18 }
 0x18b   : > { %vm2160_vm4 = vcmp.le.f32.partialorder %v4063_v16, %v2430_v17  ;;  %vm2161_vm5 = vcmp.le.f32.partialorder %v4065_v29, %v2430_v17  ;;  %vm2162_vm15 = vcmp.le.f32.partialorder %v4067_v7, %v2430_v17  ;;  %vm2163_vm14 = vcmp.le.f32.partialorder %v4069_v1, %v2430_v17 }
 0x18c   : > { %v2168_v22 = vsel %vm2160_vm4, %v2431_v57, 0.0  ;;  %v2169_v39 = vsel %vm2161_vm5, %v2431_v57, 0.0  ;;  %v2170_v38 = vsel %vm2162_vm15, %v2431_v57, 0.0  ;;  %v2171_v10 = vsel %vm2163_vm14, %v2431_v57, 0.0 }
 0x18d   : > { %v2172_v0 = vadd.f32 %v2168_v22, %v2150_v9  ;;  %v2173_v47 = vadd.f32 %v2169_v39, %v2151_v8  ;;  %v2174_v35 = vadd.f32 %v2170_v38, %v2152_v26  ;;  %v2175_v34 = vadd.f32 %v2171_v10, %v2153_v25 }
 0x18e   : > { %vm2182_vm3 = vcmp.le.f32.partialorder %v4063_v16, %v2432_v63  ;;  %vm2183_vm6 = vcmp.le.f32.partialorder %v4065_v29, %v2432_v63  ;;  %vm2184_vm8 = vcmp.le.f32.partialorder %v4067_v7, %v2432_v63  ;;  %vm2185_vm7 = vcmp.le.f32.partialorder %v4069_v1, %v2432_v63 }
 0x18f   : > { %v2190_v19 = vsel %vm2182_vm3, %v2433_v51, 0.0  ;;  %v2191_v30 = vsel %vm2183_vm6, %v2433_v51, 0.0  ;;  %v2192_v55 = vsel %vm2184_vm8, %v2433_v51, 0.0  ;;  %v2193_v15 = vsel %vm2185_vm7, %v2433_v51, 0.0 }
 0x190   : > { %v2194_v58 = vadd.f32 %v2190_v19, %v2172_v0  ;;  %v2195_v20 = vadd.f32 %v2191_v30, %v2173_v47  ;;  %v2196_v21 = vadd.f32 %v2192_v55, %v2174_v35  ;;  %v2197_v13 = vadd.f32 %v2193_v15, %v2175_v34 }
 0x191   : > { %v2198_v12 = vstv %s2417_s10  ;;  %v2686_v2 = vmov (%p2011_p0), 0.0  }
 0x192   : > { %v2219_v52 = vadd.f32 1e-07, %v2194_v58  ;;  %v2220_v24 = vadd.f32 1e-07, %v2195_v20  ;;  %v2221_v23 = vadd.f32 1e-07, %v2196_v21  ;;  %v2199_v16 = vadd.s32 %v2198_v12, %v3670_v44 }
 0x193   : > { %v2222_v29 = vadd.f32 1e-07, %v2197_v13  ;;  %v2200_v7 = vadd.s32 %v2198_v12, %v3677_v45  ;;  %v2201_v1 = vadd.s32 %v2198_v12, %v3680_v4  ;;  %v2202_v37 = vadd.s32 %v2198_v12, %v3692_v50 }
 0x194   : > { %2632 = vlog2.f32 %v2219_v52  ;;  %vm2203_vm11 = vcmp.ne.s32.totalorder %v2199_v16, %v3875_v33  ;;  %vm2207_vm9 = vcmp.lt.s32.totalorder %v2199_v16, 8 }
 0x195   : > { %2634 = vlog2.f32 %v2220_v24  ;;  %vm2204_vm12 = vcmp.ne.s32.totalorder %v2200_v7, %v3875_v33  ;;  %vm2208_vm13 = vcmp.lt.s32.totalorder %v2200_v7, 8  ;;  %vm2205_vm0 = vcmp.ne.s32.totalorder %v2201_v1, %v3875_v33  ;;  %vm2211_vm5 = vmand %vm2203_vm11, %vm2207_vm9 }
 0x196   : > { %2636 = vlog2.f32 %v2221_v23  ;;  %vm2209_vm1 = vcmp.lt.s32.totalorder %v2201_v1, 8  ;;  %vm2206_vm2 = vcmp.ne.s32.totalorder %v2202_v37, %v3875_v33  ;;  %vm2210_vm4 = vcmp.lt.s32.totalorder %v2202_v37, 8  ;;  %vm2212_vm15 = vmand %vm2204_vm12, %vm2208_vm13 }
 0x197   : > { %2638 = vlog2.f32 %v2222_v29  ;;  %vm2213_vm14 = vmand %vm2205_vm0, %vm2209_vm1  ;;  %vm2252_vm9 = vcmask (%p2011_p0), 0  }
 0x198   : > { %vm2214_vm3 = vmand %vm2206_vm2, %vm2210_vm4  ;;  %2253 = vst.msk [vmem:[#allocation4] sm:$0x1] (%p2011_p0), %vm2252_vm9, %v2686_v2 }
 0x199   : > { %vm2215_vm6 = vmand %vm2211_vm5, %vm1923_vm10 }
 0x19a   : > { %vm2216_vm8 = vmand %vm2212_vm15, %vm1923_vm10 }
 0x19b   : > { %vm2217_vm7 = vmand %vm2213_vm14, %vm1923_vm10 }
 0x19c   : > { %vm2218_vm11 = vmand %vm2214_vm3, %vm1923_vm10 }
 0x19e   : > { %v2633_v32 = vpop.eup %2632 }
 0x19f   : > { %v2635_v49 = vpop.eup %2634  ;;  %v2224_v14 = vmul.f32 0.6931472, %v2633_v32  ;;  %v2254_v5 = vld [vmem:[#allocation4] sm:$0x1] (%p2011_p0) }
 0x1a0   : > { %v2637_v54 = vpop.eup %2636  ;;  %v2226_v53 = vmul.f32 0.6931472, %v2635_v49 }
 0x1a1   : > { %v2639_v59 = vpop.eup %2638  ;;  %v2228_v62 = vmul.f32 0.6931472, %v2637_v54  ;;  %v2231_v6 = vsel %vm2215_vm6, %v2224_v14, 0.0 }
 0x1a2   : > { %v2230_v42 = vmul.f32 0.6931472, %v2639_v59  ;;  %v2232_v3 = vsel %vm2216_vm8, %v2226_v53, 0.0 }
 0x1a3   : > { %v2233_v60 = vsel %vm2217_vm7, %v2228_v62, 0.0  ;;  %v2235_v48 = vadd.f32 %v2232_v3, %v2231_v6 }
 0x1a4   : > { %v2234_v41 = vsel %vm2218_vm11, %v2230_v42, 0.0 }
 0x1a5   : > { %v2236_v46 = vadd.f32 %v2235_v48, %v2233_v60 }
 0x1a7   : > { %v2237_v61 = vadd.f32 %v2236_v46, %v2234_v41 }
 0x1a9   : > { %v2238_v27 = vrot.slane %v2237_v61, 4 }
 0x1ab   : > { %v2239_v28 = vadd.f32 %v2238_v27, %v2237_v61 }
 0x1ad   : > { %v2240_v56 = vrot.slane %v2239_v28, 2 }
 0x1af   : > { %v2241_v31 = vadd.f32 %v2240_v56, %v2239_v28 }
 0x1b1   : > { %v2242_v18 = vrot.slane %v2241_v31, 1  ;;  %2013 = sbr.rel (!%p2011_p0) target bundleno = 373 (0x175), region = 52 }
 0x1b3   : > { %v2243_v17 = vadd.f32 %v2242_v18, %v2241_v31 }
 0x1b5   : > { %v2244_v11 = vadd.f32 %v2674_v36, %v2243_v17  }
 0x1b7   : > { %v4357_v36 = vmov %v2244_v11  ;;  %v2245_v43 = vsub.f32 (%p2011_p0), %v4046_v40, %v2244_v11 }
 0x1b9   :  { %2246 = vadd.xlane.f32.xlu0 %v2245_v43 }
 0x246   :  { %v2247_v57 = vpop.xlane.xlu0 %2246 }
 0x247   :  { %v2255_v9 = vadd.f32 %v2254_v5, %v2247_v57 }
 0x249   :  { %2257 = vst.msk [vmem:[#allocation4] sm:$0x1] %vm2252_vm9, %v2255_v9 }
 0x24a   :  { %2651 = shalt.err (!%p2648_p5)
}
 0x24b   :  { %s2652_s16 = scalar_lea.hbm %s4145_s5, 16 }
 0x24c   :  { %p2653_p6 = scmp.ne.s32.totalorder %s4145_s5, %s2652_s16  ;;  %p2656_p7 = scmp.lt.u32.totalorder %s2652_s16, %s4145_s5 }
 0x24e   :  { %p2658_p8 = pnand %p2656_p7, %p2653_p6 }
 0x250   :  { %2661 = shalt.err (!%p2658_p8)
}
 0x251   :  { %2267 = dma.vmem_to_hbm [thread:$0]  %s2265_s0, 16, %s4145_s5, [#allocation5]  }
 0x252   :  { %2670 = dma.done.wait [#allocation5], 16  }
 0x253   :  { %2671 = vsyncadd [#allocation5], 4294967280 }
 0x254   :  { %2271 = vsyncpa [#allocation5], 1 }

</bundles_post_ra>
